<compile_context>
chip_gen: v5e
topology: v5e:2x2
jax: 0.10.0
libtpu: 0.0.40
codegen_flags: <defaults>
</compile_context>

<pallas_src>
from functools import partial

import jax
import jax.numpy as jnp
import numpy as np
from jax.experimental import pallas as pl
from jax.experimental.pallas import tpu as pltpu


# ----------------------------------------------------------------------------
# Fused kernel: LSTM recurrence + MLP head, everything resident in VMEM.
# Gate column order (after param prep) is [i, f, o, g]; i/f/o pre-activations
# were pre-scaled by 0.5 so sigmoid(z) is recovered as 0.5*tanh(z/2) + 0.5.
# ----------------------------------------------------------------------------
def fused_kernel(x2d_ref, ci_ref,
                 wih_ref, whh_ref, b_ref,
                 w1h_ref, w1c_ref, b1_ref,
                 w2_ref, b2_ref, w3_ref, b3_ref, w4_ref, b4_ref,
                 out_seq_ref, out_mlp_ref, *, eup_dtype):
    T, B, H = out_seq_ref.shape
    bf16 = jnp.bfloat16
    f32 = jnp.float32

    # ---- hoisted input projection for all timesteps (one MXU push) ----------
    # (T*B, in) @ (in, 4H) + bias  ->  (T*B, 4H) f32
    gates_x = jnp.dot(x2d_ref[...].astype(bf16), wih_ref[...],
                      preferred_element_type=f32) + b_ref[...]

    # ---- hoisted content_info branch of the MLP first layer -----------------
    # No dependence on h, so the scheduler can hide this MXU work under the
    # recurrence instead of paying it serially in the epilogue.
    y_c = jnp.dot(ci_ref[...].astype(bf16), w1c_ref[...],
                  preferred_element_type=f32) + b1_ref[...]

    whh = whh_ref[...]                                   # (H, 4H) bf16

    h = jnp.zeros((B, H), f32)
    c = jnp.zeros((B, H), f32)

    # ---- recurrence: fully unrolled, 1 matmul + 2 transcendentals per step --
    for t in range(T):
        g_pre = gates_x[t * B:(t + 1) * B, :] + jnp.dot(
            h.astype(bf16), whh, preferred_element_type=f32)   # (B, 4H) f32
        # Single full-vreg tanh on the EUP (bf16 input on v6e/v7x only).
        th = jnp.tanh(g_pre.astype(eup_dtype)).astype(f32)     # (B, 4H)
        sg = 0.5 * th + 0.5                                    # sigmoid(i,f,o)
        i_g = sg[:, 0 * H:1 * H]
        f_g = sg[:, 1 * H:2 * H]
        o_g = sg[:, 2 * H:3 * H]
        g_g = th[:, 3 * H:4 * H]                               # tanh(g) direct
        c = f_g * c + i_g * g_g                                # state math f32
        h = o_g * jnp.tanh(c)                                  # f32 EUP
        out_seq_ref[t] = h                                     # (B, H) store

    # ---- MLP head, fused (concat avoided via split first layer) -------------
    def leaky(y):
        return jnp.maximum(y, 0.2 * y)                     # LeakyReLU(0.2)

    y = jnp.dot(h.astype(bf16), w1h_ref[...], preferred_element_type=f32) + y_c
    y = leaky(y)
    y = jnp.dot(y.astype(bf16), w2_ref[...], preferred_element_type=f32) + b2_ref[...]
    y = leaky(y)
    y = jnp.dot(y.astype(bf16), w3_ref[...], preferred_element_type=f32) + b3_ref[...]
    y = leaky(y)
    y = jnp.dot(y.astype(bf16), w4_ref[...], preferred_element_type=f32) + b4_ref[...]
    out_mlp_ref[...] = y


def _eup_bf16_ok():
    """bf16 transcendental (EUP) path exists on v6e/v7x; keep f32 elsewhere
    (v5e and older have no bf16 EUP/VPU path — review guidance)."""
    try:
        kind = jax.devices()[0].device_kind.lower()
    except Exception:
        return False
    return ("v6" in kind) or ("v7" in kind)


def evolve_lstm_forward(trx, content_info, kparams):
    """Fused forward: returns (output (T,B,H), out (B,out_dim))."""
    T, B, in_dim = trx.shape
    whh = kparams[1]
    H = whh.shape[0]
    out_dim = kparams[-2].shape[1]

    eup_dtype = jnp.bfloat16 if _eup_bf16_ok() else jnp.float32

    x2d = trx.reshape(T * B, in_dim)                       # layout-free view
    vmem = pl.BlockSpec(memory_space=pltpu.MemorySpace.VMEM)

    # Total resident footprint < 1 MiB -> no grid tiling / vmem_limit needed.
    output, out = pl.pallas_call(
        partial(fused_kernel, eup_dtype=eup_dtype),
        out_shape=(jax.ShapeDtypeStruct((T, B, H), jnp.float32),
                   jax.ShapeDtypeStruct((B, out_dim), jnp.float32)),
        in_specs=[vmem] * 14,
        out_specs=(vmem, vmem),
    )(x2d, content_info, *kparams)
    return output, out


# ----------------------------------------------------------------------------
# Parameter init (PyTorch layout / PyTorch-style uniform bounds)
# ----------------------------------------------------------------------------
def init_params(key, in_dim, H, out_dim):
    ks = jax.random.split(key, 12)

    def u(k, shape, bound):
        return jax.random.uniform(k, shape, jnp.float32, -bound, bound)

    kb = 1.0 / np.sqrt(H)
    w_ih = u(ks[0], (4 * H, in_dim), kb)       # torch layout (4H, in), gates [i,f,g,o]
    w_hh = u(ks[1], (4 * H, H), kb)
    b_ih = u(ks[2], (4 * H,), kb)
    b_hh = u(ks[3], (4 * H,), kb)
    lstm_raw = (w_ih, w_hh, b_ih, b_hh)

    dims = [(H + in_dim, 512), (512, 256), (256, 128), (128, out_dim)]
    mlp_raw = []
    ki = 4
    for (din, dout) in dims:
        bound = 1.0 / np.sqrt(din)
        mlp_raw.append((u(ks[ki], (dout, din), bound),     # torch layout (out, in)
                        u(ks[ki + 1], (dout,), bound)))
        ki += 2
    return lstm_raw, mlp_raw


def prepare_kernel_params(lstm_raw, mlp_raw, H):
    """Transpose to (in,out), reorder gates [i,f,g,o]->[i,f,o,g], combine
    biases, pre-scale the i/f/o gate columns by 0.5 (so sigmoid(z) becomes
    0.5*tanh(z/2)+0.5 in-kernel; scaling by a power of two commutes exactly
    with the bf16 cast), cast weights to bf16, and split the first MLP layer
    for the concat-free head."""
    w_ih, w_hh, b_ih, b_hh = lstm_raw
    perm = np.concatenate([np.arange(0, 2 * H),        # i, f
                           np.arange(3 * H, 4 * H),    # o
                           np.arange(2 * H, 3 * H)])   # g
    gate_scale = jnp.concatenate([jnp.full((3 * H,), 0.5, jnp.float32),  # i,f,o
                                  jnp.ones((H,), jnp.float32)])          # g
    wih = (w_ih[perm].T * gate_scale[None, :]).astype(jnp.bfloat16)  # (in, 4H)
    whh = (w_hh[perm].T * gate_scale[None, :]).astype(jnp.bfloat16)  # (H, 4H)
    b = ((b_ih + b_hh)[perm] * gate_scale).reshape(1, 4 * H).astype(jnp.float32)

    (w1, b1), (w2, b2), (w3, b3), (w4, b4) = mlp_raw
    w1t = w1.T                                          # (H + in_dim, 512)
    w1h = w1t[:H].astype(jnp.bfloat16)                  # (H, 512)
    w1c = w1t[H:].astype(jnp.bfloat16)                  # (in_dim, 512)
    return (wih, whh, b,
            w1h, w1c, b1.reshape(1, -1).astype(jnp.float32),
            w2.T.astype(jnp.bfloat16), b2.reshape(1, -1).astype(jnp.float32),
            w3.T.astype(jnp.bfloat16), b3.reshape(1, -1).astype(jnp.float32),
            w4.T.astype(jnp.bfloat16), b4.reshape(1, -1).astype(jnp.float32))


# ----------------------------------------------------------------------------
# Pure-JAX reference (PyTorch gate order / layout). Uses the same bf16-quantized
# weight values as the kernel so the check isolates kernel math; activations
# stay f32 here, so a loose-ish tolerance covers the kernel's bf16 activations.
# ----------------------------------------------------------------------------
def reference_forward(trx, content_info, lstm_raw, mlp_raw):
    q = lambda w: w.astype(jnp.bfloat16).astype(jnp.float32)
    w_ih, w_hh, b_ih, b_hh = lstm_raw
    wih_T = q(w_ih).T
    whh_T = q(w_hh).T
    b = (b_ih + b_hh)[None, :]
    T, B, _ = trx.shape
    H = w_hh.shape[1]
    h = jnp.zeros((B, H), jnp.float32)
    c = jnp.zeros((B, H), jnp.float32)
    outs = []
    for t in range(T):
        gates = trx[t] @ wih_T + h @ whh_T + b
        i = jax.nn.sigmoid(gates[:, :H])
        f = jax.nn.sigmoid(gates[:, H:2 * H])
        g = jnp.tanh(gates[:, 2 * H:3 * H])
        o = jax.nn.sigmoid(gates[:, 3 * H:])
        c = f * c + i * g
        h = o * jnp.tanh(c)
        outs.append(h)
    output = jnp.stack(outs)

    x = jnp.concatenate([output[-1], content_info], axis=1)

    def dense(x, w, bb, act):
        y = x @ q(w).T + bb
        return jnp.where(y > 0, y, 0.2 * y) if act else y

    (w1, b1), (w2, b2), (w3, b3), (w4, b4) = mlp_raw
    y = dense(x, w1, b1, True)
    y = dense(y, w2, b2, True)
    y = dense(y, w3, b3, True)
    out = dense(y, w4, b4, False)
    return output, out


if __name__ == "__main__":
    T, B, in_dim, rnn_outdim, out_dim = 8, 8, 16, 32, 10

    key = jax.random.PRNGKey(0)
    k_x, k_c, k_p = jax.random.split(key, 3)
    trx = jax.random.normal(k_x, (T, B, in_dim), jnp.float32)
    content_info = jax.random.normal(k_c, (B, in_dim), jnp.float32)

    lstm_raw, mlp_raw = init_params(k_p, in_dim, rnn_outdim, out_dim)
    kparams = prepare_kernel_params(lstm_raw, mlp_raw, rnn_outdim)

    fwd = jax.jit(evolve_lstm_forward)
    output, out = fwd(trx, content_info, kparams)
    jax.block_until_ready((output, out))

    ref_output, ref_out = reference_forward(trx, content_info, lstm_raw, mlp_raw)
    # Tolerances account for bf16 activation casts on the MXU/EUP paths in the
    # kernel (T=8, so bf16-h recurrence drift stays small).
    np.testing.assert_allclose(np.asarray(output), np.asarray(ref_output),
                               rtol=2e-2, atol=2e-2)
    np.testing.assert_allclose(np.asarray(out), np.asarray(ref_out),
                               rtol=2e-2, atol=5e-2)

    print("KERNEL_OK")
</pallas_src>

<mosaic_0001>
module attributes {stable_mosaic.version = 11 : i64} {
  func.func @fused_kernel(%arg0: memref<64x16xf32, #tpu.memory_space<vmem>>, %arg1: memref<8x16xf32, #tpu.memory_space<vmem>>, %arg2: memref<16x128xbf16, #tpu.memory_space<vmem>>, %arg3: memref<32x128xbf16, #tpu.memory_space<vmem>>, %arg4: memref<1x128xf32, #tpu.memory_space<vmem>>, %arg5: memref<32x512xbf16, #tpu.memory_space<vmem>>, %arg6: memref<16x512xbf16, #tpu.memory_space<vmem>>, %arg7: memref<1x512xf32, #tpu.memory_space<vmem>>, %arg8: memref<512x256xbf16, #tpu.memory_space<vmem>>, %arg9: memref<1x256xf32, #tpu.memory_space<vmem>>, %arg10: memref<256x128xbf16, #tpu.memory_space<vmem>>, %arg11: memref<1x128xf32, #tpu.memory_space<vmem>>, %arg12: memref<128x10xbf16, #tpu.memory_space<vmem>>, %arg13: memref<1x10xf32, #tpu.memory_space<vmem>>, %arg14: memref<8x8x32xf32, #tpu.memory_space<vmem>>, %arg15: memref<8x10xf32, #tpu.memory_space<vmem>>) attributes {dimension_semantics = [], scalar_prefetch = 0 : i64, scratch_operands = 0 : i64, tpu.core_type = #tpu.core_type<tc>} {
    %c0 = arith.constant 0 : index
    %c0_0 = arith.constant 0 : index
    %0 = vector.load %arg0[%c0, %c0_0] : memref<64x16xf32, #tpu.memory_space<vmem>>, vector<64x16xf32>
    %1 = arith.truncf %0 : vector<64x16xf32> to vector<64x16xbf16>
    %c0_1 = arith.constant 0 : index
    %c0_2 = arith.constant 0 : index
    %2 = vector.load %arg2[%c0_1, %c0_2] : memref<16x128xbf16, #tpu.memory_space<vmem>>, vector<16x128xbf16>
    %cst = arith.constant dense<0.000000e+00> : vector<64x128xf32>
    %3 = tpu.matmul %1, %2, %cst {dimension_numbers = #tpu.dot_dimension_numbers<[1], [0], [0], [1], [0, 0, 1, 1], [], []>} : vector<64x16xbf16>, vector<16x128xbf16>, vector<64x128xf32> -> vector<64x128xf32>
    %c0_3 = arith.constant 0 : index
    %c0_4 = arith.constant 0 : index
    %4 = vector.load %arg4[%c0_3, %c0_4] : memref<1x128xf32, #tpu.memory_space<vmem>>, vector<1x128xf32>
    %5 = vector.broadcast %4 : vector<1x128xf32> to vector<64x128xf32>
    %6 = arith.addf %3, %5 : vector<64x128xf32>
    %c0_5 = arith.constant 0 : index
    %c0_6 = arith.constant 0 : index
    %7 = vector.load %arg1[%c0_5, %c0_6] : memref<8x16xf32, #tpu.memory_space<vmem>>, vector<8x16xf32>
    %8 = arith.truncf %7 : vector<8x16xf32> to vector<8x16xbf16>
    %c0_7 = arith.constant 0 : index
    %c0_8 = arith.constant 0 : index
    %9 = vector.load %arg6[%c0_7, %c0_8] : memref<16x512xbf16, #tpu.memory_space<vmem>>, vector<16x512xbf16>
    %cst_9 = arith.constant dense<0.000000e+00> : vector<8x512xf32>
    %10 = tpu.matmul %8, %9, %cst_9 {dimension_numbers = #tpu.dot_dimension_numbers<[1], [0], [0], [1], [0, 0, 1, 1], [], []>} : vector<8x16xbf16>, vector<16x512xbf16>, vector<8x512xf32> -> vector<8x512xf32>
    %c0_10 = arith.constant 0 : index
    %c0_11 = arith.constant 0 : index
    %11 = vector.load %arg7[%c0_10, %c0_11] : memref<1x512xf32, #tpu.memory_space<vmem>>, vector<1x512xf32>
    %12 = vector.broadcast %11 : vector<1x512xf32> to vector<8x512xf32>
    %13 = arith.addf %10, %12 : vector<8x512xf32>
    %c0_12 = arith.constant 0 : index
    %c0_13 = arith.constant 0 : index
    %14 = vector.load %arg3[%c0_12, %c0_13] : memref<32x128xbf16, #tpu.memory_space<vmem>>, vector<32x128xbf16>
    %cst_14 = arith.constant 0.000000e+00 : f32
    %15 = vector.broadcast %cst_14 : f32 to vector<8x32xf32>
    %cst_15 = arith.constant 0.000000e+00 : f32
    %16 = vector.broadcast %cst_15 : f32 to vector<8x32xf32>
    %17 = vector.extract_strided_slice %6 {offsets = [0, 0], sizes = [8, 128], strides = [1, 1]} : vector<64x128xf32> to vector<8x128xf32>
    %18 = arith.truncf %15 : vector<8x32xf32> to vector<8x32xbf16>
    %cst_16 = arith.constant dense<0.000000e+00> : vector<8x128xf32>
    %19 = tpu.matmul %18, %14, %cst_16 {dimension_numbers = #tpu.dot_dimension_numbers<[1], [0], [0], [1], [0, 0, 1, 1], [], []>} : vector<8x32xbf16>, vector<32x128xbf16>, vector<8x128xf32> -> vector<8x128xf32>
    %20 = arith.addf %17, %19 : vector<8x128xf32>
    %21 = math.tanh %20 : vector<8x128xf32>
    %cst_17 = arith.constant 5.000000e-01 : f32
    %22 = vector.broadcast %cst_17 : f32 to vector<8x128xf32>
    %23 = arith.mulf %22, %21 : vector<8x128xf32>
    %cst_18 = arith.constant 5.000000e-01 : f32
    %24 = vector.broadcast %cst_18 : f32 to vector<8x128xf32>
    %25 = arith.addf %23, %24 : vector<8x128xf32>
    %26 = vector.extract_strided_slice %25 {offsets = [0, 0], sizes = [8, 32], strides = [1, 1]} : vector<8x128xf32> to vector<8x32xf32>
    %27 = vector.extract_strided_slice %25 {offsets = [0, 32], sizes = [8, 32], strides = [1, 1]} : vector<8x128xf32> to vector<8x32xf32>
    %28 = vector.extract_strided_slice %25 {offsets = [0, 64], sizes = [8, 32], strides = [1, 1]} : vector<8x128xf32> to vector<8x32xf32>
    %29 = vector.extract_strided_slice %21 {offsets = [0, 96], sizes = [8, 32], strides = [1, 1]} : vector<8x128xf32> to vector<8x32xf32>
    %30 = arith.mulf %27, %16 : vector<8x32xf32>
    %31 = arith.mulf %26, %29 : vector<8x32xf32>
    %32 = arith.addf %30, %31 : vector<8x32xf32>
    %33 = math.tanh %32 : vector<8x32xf32>
    %34 = arith.mulf %28, %33 : vector<8x32xf32>
    %c0_19 = arith.constant 0 : index
    %c0_20 = arith.constant 0 : index
    %c0_21 = arith.constant 0 : index
    %35 = vector.load %arg14[%c0_19, %c0_20, %c0_21] : memref<8x8x32xf32, #tpu.memory_space<vmem>>, vector<1x8x32xf32>
    %36 = vector.shape_cast %35 : vector<1x8x32xf32> to vector<8x32xf32>
    %37 = vector.shape_cast %34 : vector<8x32xf32> to vector<1x8x32xf32>
    tpu.vector_store %arg14[%c0_19, %c0_20, %c0_21], %37 {strides = array<i32>} : memref<8x8x32xf32, #tpu.memory_space<vmem>>, vector<1x8x32xf32>,
    %38 = vector.extract_strided_slice %6 {offsets = [8, 0], sizes = [8, 128], strides = [1, 1]} : vector<64x128xf32> to vector<8x128xf32>
    %39 = arith.truncf %34 : vector<8x32xf32> to vector<8x32xbf16>
    %cst_22 = arith.constant dense<0.000000e+00> : vector<8x128xf32>
    %40 = tpu.matmul %39, %14, %cst_22 {dimension_numbers = #tpu.dot_dimension_numbers<[1], [0], [0], [1], [0, 0, 1, 1], [], []>} : vector<8x32xbf16>, vector<32x128xbf16>, vector<8x128xf32> -> vector<8x128xf32>
    %41 = arith.addf %38, %40 : vector<8x128xf32>
    %42 = math.tanh %41 : vector<8x128xf32>
    %cst_23 = arith.constant 5.000000e-01 : f32
    %43 = vector.broadcast %cst_23 : f32 to vector<8x128xf32>
    %44 = arith.mulf %43, %42 : vector<8x128xf32>
    %cst_24 = arith.constant 5.000000e-01 : f32
    %45 = vector.broadcast %cst_24 : f32 to vector<8x128xf32>
    %46 = arith.addf %44, %45 : vector<8x128xf32>
    %47 = vector.extract_strided_slice %46 {offsets = [0, 0], sizes = [8, 32], strides = [1, 1]} : vector<8x128xf32> to vector<8x32xf32>
    %48 = vector.extract_strided_slice %46 {offsets = [0, 32], sizes = [8, 32], strides = [1, 1]} : vector<8x128xf32> to vector<8x32xf32>
    %49 = vector.extract_strided_slice %46 {offsets = [0, 64], sizes = [8, 32], strides = [1, 1]} : vector<8x128xf32> to vector<8x32xf32>
    %50 = vector.extract_strided_slice %42 {offsets = [0, 96], sizes = [8, 32], strides = [1, 1]} : vector<8x128xf32> to vector<8x32xf32>
    %51 = arith.mulf %48, %32 : vector<8x32xf32>
    %52 = arith.mulf %47, %50 : vector<8x32xf32>
    %53 = arith.addf %51, %52 : vector<8x32xf32>
    %54 = math.tanh %53 : vector<8x32xf32>
    %55 = arith.mulf %49, %54 : vector<8x32xf32>
    %c1 = arith.constant 1 : index
    %c0_25 = arith.constant 0 : index
    %c0_26 = arith.constant 0 : index
    %56 = vector.load %arg14[%c1, %c0_25, %c0_26] : memref<8x8x32xf32, #tpu.memory_space<vmem>>, vector<1x8x32xf32>
    %57 = vector.shape_cast %56 : vector<1x8x32xf32> to vector<8x32xf32>
    %58 = vector.shape_cast %55 : vector<8x32xf32> to vector<1x8x32xf32>
    tpu.vector_store %arg14[%c1, %c0_25, %c0_26], %58 {strides = array<i32>} : memref<8x8x32xf32, #tpu.memory_space<vmem>>, vector<1x8x32xf32>,
    %59 = vector.extract_strided_slice %6 {offsets = [16, 0], sizes = [8, 128], strides = [1, 1]} : vector<64x128xf32> to vector<8x128xf32>
    %60 = arith.truncf %55 : vector<8x32xf32> to vector<8x32xbf16>
    %cst_27 = arith.constant dense<0.000000e+00> : vector<8x128xf32>
    %61 = tpu.matmul %60, %14, %cst_27 {dimension_numbers = #tpu.dot_dimension_numbers<[1], [0], [0], [1], [0, 0, 1, 1], [], []>} : vector<8x32xbf16>, vector<32x128xbf16>, vector<8x128xf32> -> vector<8x128xf32>
    %62 = arith.addf %59, %61 : vector<8x128xf32>
    %63 = math.tanh %62 : vector<8x128xf32>
    %cst_28 = arith.constant 5.000000e-01 : f32
    %64 = vector.broadcast %cst_28 : f32 to vector<8x128xf32>
    %65 = arith.mulf %64, %63 : vector<8x128xf32>
    %cst_29 = arith.constant 5.000000e-01 : f32
    %66 = vector.broadcast %cst_29 : f32 to vector<8x128xf32>
    %67 = arith.addf %65, %66 : vector<8x128xf32>
    %68 = vector.extract_strided_slice %67 {offsets = [0, 0], sizes = [8, 32], strides = [1, 1]} : vector<8x128xf32> to vector<8x32xf32>
    %69 = vector.extract_strided_slice %67 {offsets = [0, 32], sizes = [8, 32], strides = [1, 1]} : vector<8x128xf32> to vector<8x32xf32>
    %70 = vector.extract_strided_slice %67 {offsets = [0, 64], sizes = [8, 32], strides = [1, 1]} : vector<8x128xf32> to vector<8x32xf32>
    %71 = vector.extract_strided_slice %63 {offsets = [0, 96], sizes = [8, 32], strides = [1, 1]} : vector<8x128xf32> to vector<8x32xf32>
    %72 = arith.mulf %69, %53 : vector<8x32xf32>
    %73 = arith.mulf %68, %71 : vector<8x32xf32>
    %74 = arith.addf %72, %73 : vector<8x32xf32>
    %75 = math.tanh %74 : vector<8x32xf32>
    %76 = arith.mulf %70, %75 : vector<8x32xf32>
    %c2 = arith.constant 2 : index
    %c0_30 = arith.constant 0 : index
    %c0_31 = arith.constant 0 : index
    %77 = vector.load %arg14[%c2, %c0_30, %c0_31] : memref<8x8x32xf32, #tpu.memory_space<vmem>>, vector<1x8x32xf32>
    %78 = vector.shape_cast %77 : vector<1x8x32xf32> to vector<8x32xf32>
    %79 = vector.shape_cast %76 : vector<8x32xf32> to vector<1x8x32xf32>
    tpu.vector_store %arg14[%c2, %c0_30, %c0_31], %79 {strides = array<i32>} : memref<8x8x32xf32, #tpu.memory_space<vmem>>, vector<1x8x32xf32>,
    %80 = vector.extract_strided_slice %6 {offsets = [24, 0], sizes = [8, 128], strides = [1, 1]} : vector<64x128xf32> to vector<8x128xf32>
    %81 = arith.truncf %76 : vector<8x32xf32> to vector<8x32xbf16>
    %cst_32 = arith.constant dense<0.000000e+00> : vector<8x128xf32>
    %82 = tpu.matmul %81, %14, %cst_32 {dimension_numbers = #tpu.dot_dimension_numbers<[1], [0], [0], [1], [0, 0, 1, 1], [], []>} : vector<8x32xbf16>, vector<32x128xbf16>, vector<8x128xf32> -> vector<8x128xf32>
    %83 = arith.addf %80, %82 : vector<8x128xf32>
    %84 = math.tanh %83 : vector<8x128xf32>
    %cst_33 = arith.constant 5.000000e-01 : f32
    %85 = vector.broadcast %cst_33 : f32 to vector<8x128xf32>
    %86 = arith.mulf %85, %84 : vector<8x128xf32>
    %cst_34 = arith.constant 5.000000e-01 : f32
    %87 = vector.broadcast %cst_34 : f32 to vector<8x128xf32>
    %88 = arith.addf %86, %87 : vector<8x128xf32>
    %89 = vector.extract_strided_slice %88 {offsets = [0, 0], sizes = [8, 32], strides = [1, 1]} : vector<8x128xf32> to vector<8x32xf32>
    %90 = vector.extract_strided_slice %88 {offsets = [0, 32], sizes = [8, 32], strides = [1, 1]} : vector<8x128xf32> to vector<8x32xf32>
    %91 = vector.extract_strided_slice %88 {offsets = [0, 64], sizes = [8, 32], strides = [1, 1]} : vector<8x128xf32> to vector<8x32xf32>
    %92 = vector.extract_strided_slice %84 {offsets = [0, 96], sizes = [8, 32], strides = [1, 1]} : vector<8x128xf32> to vector<8x32xf32>
    %93 = arith.mulf %90, %74 : vector<8x32xf32>
    %94 = arith.mulf %89, %92 : vector<8x32xf32>
    %95 = arith.addf %93, %94 : vector<8x32xf32>
    %96 = math.tanh %95 : vector<8x32xf32>
    %97 = arith.mulf %91, %96 : vector<8x32xf32>
    %c3 = arith.constant 3 : index
    %c0_35 = arith.constant 0 : index
    %c0_36 = arith.constant 0 : index
    %98 = vector.load %arg14[%c3, %c0_35, %c0_36] : memref<8x8x32xf32, #tpu.memory_space<vmem>>, vector<1x8x32xf32>
    %99 = vector.shape_cast %98 : vector<1x8x32xf32> to vector<8x32xf32>
    %100 = vector.shape_cast %97 : vector<8x32xf32> to vector<1x8x32xf32>
    tpu.vector_store %arg14[%c3, %c0_35, %c0_36], %100 {strides = array<i32>} : memref<8x8x32xf32, #tpu.memory_space<vmem>>, vector<1x8x32xf32>,
    %101 = vector.extract_strided_slice %6 {offsets = [32, 0], sizes = [8, 128], strides = [1, 1]} : vector<64x128xf32> to vector<8x128xf32>
    %102 = arith.truncf %97 : vector<8x32xf32> to vector<8x32xbf16>
    %cst_37 = arith.constant dense<0.000000e+00> : vector<8x128xf32>
    %103 = tpu.matmul %102, %14, %cst_37 {dimension_numbers = #tpu.dot_dimension_numbers<[1], [0], [0], [1], [0, 0, 1, 1], [], []>} : vector<8x32xbf16>, vector<32x128xbf16>, vector<8x128xf32> -> vector<8x128xf32>
    %104 = arith.addf %101, %103 : vector<8x128xf32>
    %105 = math.tanh %104 : vector<8x128xf32>
    %cst_38 = arith.constant 5.000000e-01 : f32
    %106 = vector.broadcast %cst_38 : f32 to vector<8x128xf32>
    %107 = arith.mulf %106, %105 : vector<8x128xf32>
    %cst_39 = arith.constant 5.000000e-01 : f32
    %108 = vector.broadcast %cst_39 : f32 to vector<8x128xf32>
    %109 = arith.addf %107, %108 : vector<8x128xf32>
    %110 = vector.extract_strided_slice %109 {offsets = [0, 0], sizes = [8, 32], strides = [1, 1]} : vector<8x128xf32> to vector<8x32xf32>
    %111 = vector.extract_strided_slice %109 {offsets = [0, 32], sizes = [8, 32], strides = [1, 1]} : vector<8x128xf32> to vector<8x32xf32>
    %112 = vector.extract_strided_slice %109 {offsets = [0, 64], sizes = [8, 32], strides = [1, 1]} : vector<8x128xf32> to vector<8x32xf32>
    %113 = vector.extract_strided_slice %105 {offsets = [0, 96], sizes = [8, 32], strides = [1, 1]} : vector<8x128xf32> to vector<8x32xf32>
    %114 = arith.mulf %111, %95 : vector<8x32xf32>
    %115 = arith.mulf %110, %113 : vector<8x32xf32>
    %116 = arith.addf %114, %115 : vector<8x32xf32>
    %117 = math.tanh %116 : vector<8x32xf32>
    %118 = arith.mulf %112, %117 : vector<8x32xf32>
    %c4 = arith.constant 4 : index
    %c0_40 = arith.constant 0 : index
    %c0_41 = arith.constant 0 : index
    %119 = vector.load %arg14[%c4, %c0_40, %c0_41] : memref<8x8x32xf32, #tpu.memory_space<vmem>>, vector<1x8x32xf32>
    %120 = vector.shape_cast %119 : vector<1x8x32xf32> to vector<8x32xf32>
    %121 = vector.shape_cast %118 : vector<8x32xf32> to vector<1x8x32xf32>
    tpu.vector_store %arg14[%c4, %c0_40, %c0_41], %121 {strides = array<i32>} : memref<8x8x32xf32, #tpu.memory_space<vmem>>, vector<1x8x32xf32>,
    %122 = vector.extract_strided_slice %6 {offsets = [40, 0], sizes = [8, 128], strides = [1, 1]} : vector<64x128xf32> to vector<8x128xf32>
    %123 = arith.truncf %118 : vector<8x32xf32> to vector<8x32xbf16>
    %cst_42 = arith.constant dense<0.000000e+00> : vector<8x128xf32>
    %124 = tpu.matmul %123, %14, %cst_42 {dimension_numbers = #tpu.dot_dimension_numbers<[1], [0], [0], [1], [0, 0, 1, 1], [], []>} : vector<8x32xbf16>, vector<32x128xbf16>, vector<8x128xf32> -> vector<8x128xf32>
    %125 = arith.addf %122, %124 : vector<8x128xf32>
    %126 = math.tanh %125 : vector<8x128xf32>
    %cst_43 = arith.constant 5.000000e-01 : f32
    %127 = vector.broadcast %cst_43 : f32 to vector<8x128xf32>
    %128 = arith.mulf %127, %126 : vector<8x128xf32>
    %cst_44 = arith.constant 5.000000e-01 : f32
    %129 = vector.broadcast %cst_44 : f32 to vector<8x128xf32>
    %130 = arith.addf %128, %129 : vector<8x128xf32>
    %131 = vector.extract_strided_slice %130 {offsets = [0, 0], sizes = [8, 32], strides = [1, 1]} : vector<8x128xf32> to vector<8x32xf32>
    %132 = vector.extract_strided_slice %130 {offsets = [0, 32], sizes = [8, 32], strides = [1, 1]} : vector<8x128xf32> to vector<8x32xf32>
    %133 = vector.extract_strided_slice %130 {offsets = [0, 64], sizes = [8, 32], strides = [1, 1]} : vector<8x128xf32> to vector<8x32xf32>
    %134 = vector.extract_strided_slice %126 {offsets = [0, 96], sizes = [8, 32], strides = [1, 1]} : vector<8x128xf32> to vector<8x32xf32>
    %135 = arith.mulf %132, %116 : vector<8x32xf32>
    %136 = arith.mulf %131, %134 : vector<8x32xf32>
    %137 = arith.addf %135, %136 : vector<8x32xf32>
    %138 = math.tanh %137 : vector<8x32xf32>
    %139 = arith.mulf %133, %138 : vector<8x32xf32>
    %c5 = arith.constant 5 : index
    %c0_45 = arith.constant 0 : index
    %c0_46 = arith.constant 0 : index
    %140 = vector.load %arg14[%c5, %c0_45, %c0_46] : memref<8x8x32xf32, #tpu.memory_space<vmem>>, vector<1x8x32xf32>
    %141 = vector.shape_cast %140 : vector<1x8x32xf32> to vector<8x32xf32>
    %142 = vector.shape_cast %139 : vector<8x32xf32> to vector<1x8x32xf32>
    tpu.vector_store %arg14[%c5, %c0_45, %c0_46], %142 {strides = array<i32>} : memref<8x8x32xf32, #tpu.memory_space<vmem>>, vector<1x8x32xf32>,
    %143 = vector.extract_strided_slice %6 {offsets = [48, 0], sizes = [8, 128], strides = [1, 1]} : vector<64x128xf32> to vector<8x128xf32>
    %144 = arith.truncf %139 : vector<8x32xf32> to vector<8x32xbf16>
    %cst_47 = arith.constant dense<0.000000e+00> : vector<8x128xf32>
    %145 = tpu.matmul %144, %14, %cst_47 {dimension_numbers = #tpu.dot_dimension_numbers<[1], [0], [0], [1], [0, 0, 1, 1], [], []>} : vector<8x32xbf16>, vector<32x128xbf16>, vector<8x128xf32> -> vector<8x128xf32>
    %146 = arith.addf %143, %145 : vector<8x128xf32>
    %147 = math.tanh %146 : vector<8x128xf32>
    %cst_48 = arith.constant 5.000000e-01 : f32
    %148 = vector.broadcast %cst_48 : f32 to vector<8x128xf32>
    %149 = arith.mulf %148, %147 : vector<8x128xf32>
    %cst_49 = arith.constant 5.000000e-01 : f32
    %150 = vector.broadcast %cst_49 : f32 to vector<8x128xf32>
    %151 = arith.addf %149, %150 : vector<8x128xf32>
    %152 = vector.extract_strided_slice %151 {offsets = [0, 0], sizes = [8, 32], strides = [1, 1]} : vector<8x128xf32> to vector<8x32xf32>
    %153 = vector.extract_strided_slice %151 {offsets = [0, 32], sizes = [8, 32], strides = [1, 1]} : vector<8x128xf32> to vector<8x32xf32>
    %154 = vector.extract_strided_slice %151 {offsets = [0, 64], sizes = [8, 32], strides = [1, 1]} : vector<8x128xf32> to vector<8x32xf32>
    %155 = vector.extract_strided_slice %147 {offsets = [0, 96], sizes = [8, 32], strides = [1, 1]} : vector<8x128xf32> to vector<8x32xf32>
    %156 = arith.mulf %153, %137 : vector<8x32xf32>
    %157 = arith.mulf %152, %155 : vector<8x32xf32>
    %158 = arith.addf %156, %157 : vector<8x32xf32>
    %159 = math.tanh %158 : vector<8x32xf32>
    %160 = arith.mulf %154, %159 : vector<8x32xf32>
    %c6 = arith.constant 6 : index
    %c0_50 = arith.constant 0 : index
    %c0_51 = arith.constant 0 : index
    %161 = vector.load %arg14[%c6, %c0_50, %c0_51] : memref<8x8x32xf32, #tpu.memory_space<vmem>>, vector<1x8x32xf32>
    %162 = vector.shape_cast %161 : vector<1x8x32xf32> to vector<8x32xf32>
    %163 = vector.shape_cast %160 : vector<8x32xf32> to vector<1x8x32xf32>
    tpu.vector_store %arg14[%c6, %c0_50, %c0_51], %163 {strides = array<i32>} : memref<8x8x32xf32, #tpu.memory_space<vmem>>, vector<1x8x32xf32>,
    %164 = vector.extract_strided_slice %6 {offsets = [56, 0], sizes = [8, 128], strides = [1, 1]} : vector<64x128xf32> to vector<8x128xf32>
    %165 = arith.truncf %160 : vector<8x32xf32> to vector<8x32xbf16>
    %cst_52 = arith.constant dense<0.000000e+00> : vector<8x128xf32>
    %166 = tpu.matmul %165, %14, %cst_52 {dimension_numbers = #tpu.dot_dimension_numbers<[1], [0], [0], [1], [0, 0, 1, 1], [], []>} : vector<8x32xbf16>, vector<32x128xbf16>, vector<8x128xf32> -> vector<8x128xf32>
    %167 = arith.addf %164, %166 : vector<8x128xf32>
    %168 = math.tanh %167 : vector<8x128xf32>
    %cst_53 = arith.constant 5.000000e-01 : f32
    %169 = vector.broadcast %cst_53 : f32 to vector<8x128xf32>
    %170 = arith.mulf %169, %168 : vector<8x128xf32>
    %cst_54 = arith.constant 5.000000e-01 : f32
    %171 = vector.broadcast %cst_54 : f32 to vector<8x128xf32>
    %172 = arith.addf %170, %171 : vector<8x128xf32>
    %173 = vector.extract_strided_slice %172 {offsets = [0, 0], sizes = [8, 32], strides = [1, 1]} : vector<8x128xf32> to vector<8x32xf32>
    %174 = vector.extract_strided_slice %172 {offsets = [0, 32], sizes = [8, 32], strides = [1, 1]} : vector<8x128xf32> to vector<8x32xf32>
    %175 = vector.extract_strided_slice %172 {offsets = [0, 64], sizes = [8, 32], strides = [1, 1]} : vector<8x128xf32> to vector<8x32xf32>
    %176 = vector.extract_strided_slice %168 {offsets = [0, 96], sizes = [8, 32], strides = [1, 1]} : vector<8x128xf32> to vector<8x32xf32>
    %177 = arith.mulf %174, %158 : vector<8x32xf32>
    %178 = arith.mulf %173, %176 : vector<8x32xf32>
    %179 = arith.addf %177, %178 : vector<8x32xf32>
    %180 = math.tanh %179 : vector<8x32xf32>
    %181 = arith.mulf %175, %180 : vector<8x32xf32>
    %c7 = arith.constant 7 : index
    %c0_55 = arith.constant 0 : index
    %c0_56 = arith.constant 0 : index
    %182 = vector.load %arg14[%c7, %c0_55, %c0_56] : memref<8x8x32xf32, #tpu.memory_space<vmem>>, vector<1x8x32xf32>
    %183 = vector.shape_cast %182 : vector<1x8x32xf32> to vector<8x32xf32>
    %184 = vector.shape_cast %181 : vector<8x32xf32> to vector<1x8x32xf32>
    tpu.vector_store %arg14[%c7, %c0_55, %c0_56], %184 {strides = array<i32>} : memref<8x8x32xf32, #tpu.memory_space<vmem>>, vector<1x8x32xf32>,
    %185 = arith.truncf %181 : vector<8x32xf32> to vector<8x32xbf16>
    %c0_57 = arith.constant 0 : index
    %c0_58 = arith.constant 0 : index
    %186 = vector.load %arg5[%c0_57, %c0_58] : memref<32x512xbf16, #tpu.memory_space<vmem>>, vector<32x512xbf16>
    %cst_59 = arith.constant dense<0.000000e+00> : vector<8x512xf32>
    %187 = tpu.matmul %185, %186, %cst_59 {dimension_numbers = #tpu.dot_dimension_numbers<[1], [0], [0], [1], [0, 0, 1, 1], [], []>} : vector<8x32xbf16>, vector<32x512xbf16>, vector<8x512xf32> -> vector<8x512xf32>
    %188 = arith.addf %187, %13 : vector<8x512xf32>
    %cst_60 = arith.constant 2.000000e-01 : f32
    %189 = vector.broadcast %cst_60 : f32 to vector<8x512xf32>
    %190 = arith.mulf %189, %188 : vector<8x512xf32>
    %191 = arith.maximumf %188, %190 : vector<8x512xf32>
    %192 = arith.truncf %191 : vector<8x512xf32> to vector<8x512xbf16>
    %c0_61 = arith.constant 0 : index
    %c0_62 = arith.constant 0 : index
    %193 = vector.load %arg8[%c0_61, %c0_62] : memref<512x256xbf16, #tpu.memory_space<vmem>>, vector<512x256xbf16>
    %cst_63 = arith.constant dense<0.000000e+00> : vector<8x256xf32>
    %194 = tpu.matmul %192, %193, %cst_63 {dimension_numbers = #tpu.dot_dimension_numbers<[1], [0], [0], [1], [0, 0, 1, 1], [], []>} : vector<8x512xbf16>, vector<512x256xbf16>, vector<8x256xf32> -> vector<8x256xf32>
    %c0_64 = arith.constant 0 : index
    %c0_65 = arith.constant 0 : index
    %195 = vector.load %arg9[%c0_64, %c0_65] : memref<1x256xf32, #tpu.memory_space<vmem>>, vector<1x256xf32>
    %196 = vector.broadcast %195 : vector<1x256xf32> to vector<8x256xf32>
    %197 = arith.addf %194, %196 : vector<8x256xf32>
    %cst_66 = arith.constant 2.000000e-01 : f32
    %198 = vector.broadcast %cst_66 : f32 to vector<8x256xf32>
    %199 = arith.mulf %198, %197 : vector<8x256xf32>
    %200 = arith.maximumf %197, %199 : vector<8x256xf32>
    %201 = arith.truncf %200 : vector<8x256xf32> to vector<8x256xbf16>
    %c0_67 = arith.constant 0 : index
    %c0_68 = arith.constant 0 : index
    %202 = vector.load %arg10[%c0_67, %c0_68] : memref<256x128xbf16, #tpu.memory_space<vmem>>, vector<256x128xbf16>
    %cst_69 = arith.constant dense<0.000000e+00> : vector<8x128xf32>
    %203 = tpu.matmul %201, %202, %cst_69 {dimension_numbers = #tpu.dot_dimension_numbers<[1], [0], [0], [1], [0, 0, 1, 1], [], []>} : vector<8x256xbf16>, vector<256x128xbf16>, vector<8x128xf32> -> vector<8x128xf32>
    %c0_70 = arith.constant 0 : index
    %c0_71 = arith.constant 0 : index
    %204 = vector.load %arg11[%c0_70, %c0_71] : memref<1x128xf32, #tpu.memory_space<vmem>>, vector<1x128xf32>
    %205 = vector.broadcast %204 : vector<1x128xf32> to vector<8x128xf32>
    %206 = arith.addf %203, %205 : vector<8x128xf32>
    %cst_72 = arith.constant 2.000000e-01 : f32
    %207 = vector.broadcast %cst_72 : f32 to vector<8x128xf32>
    %208 = arith.mulf %207, %206 : vector<8x128xf32>
    %209 = arith.maximumf %206, %208 : vector<8x128xf32>
    %210 = arith.truncf %209 : vector<8x128xf32> to vector<8x128xbf16>
    %c0_73 = arith.constant 0 : index
    %c0_74 = arith.constant 0 : index
    %211 = vector.load %arg12[%c0_73, %c0_74] : memref<128x10xbf16, #tpu.memory_space<vmem>>, vector<128x10xbf16>
    %cst_75 = arith.constant dense<0.000000e+00> : vector<8x10xf32>
    %212 = tpu.matmul %210, %211, %cst_75 {dimension_numbers = #tpu.dot_dimension_numbers<[1], [0], [0], [1], [0, 0, 1, 1], [], []>} : vector<8x128xbf16>, vector<128x10xbf16>, vector<8x10xf32> -> vector<8x10xf32>
    %c0_76 = arith.constant 0 : index
    %c0_77 = arith.constant 0 : index
    %213 = vector.load %arg13[%c0_76, %c0_77] : memref<1x10xf32, #tpu.memory_space<vmem>>, vector<1x10xf32>
    %214 = vector.broadcast %213 : vector<1x10xf32> to vector<8x10xf32>
    %215 = arith.addf %212, %214 : vector<8x10xf32>
    %c0_78 = arith.constant 0 : index
    %c0_79 = arith.constant 0 : index
    %216 = vector.load %arg15[%c0_78, %c0_79] : memref<8x10xf32, #tpu.memory_space<vmem>>, vector<8x10xf32>
    tpu.vector_store %arg15[%c0_78, %c0_79], %215 {strides = array<i32>} : memref<8x10xf32, #tpu.memory_space<vmem>>, vector<8x10xf32>,
    return
  }
}

</mosaic_0001>

<bundles_post_ra>
// kernel: evolve_lstm_forward.1
= control target key start
LH: loop header
LB: loop body
LE: loop exit
PB: predicated region body
PF: predicated region fallthrough
CT: control target
= control target key end

     0   :  { %21 = vsyncpa [#allocation3], 0  ;;  %s2866_s0 = inlined_call_operand.vmem [shape: f32[64,16], index: 0, kind: input, shape index: {}]   ;;  %s2867_s1 = inlined_call_operand.vmem [shape: f32[8,16], index: 1, kind: input, shape index: {}]   ;;  %s2868_s2 = inlined_call_operand.hbm [shape: bf16[16,128], index: 2, kind: input, shape index: {}]   ;;  %s2869_s3 = inlined_call_operand.hbm [shape: bf16[32,128], index: 3, kind: input, shape index: {}]   ;;  %s2870_s4 = inlined_call_operand.hbm [shape: f32[1,128], index: 4, kind: input, shape index: {}]   ;;  %s2871_s5 = inlined_call_operand.hbm [shape: bf16[32,512], index: 5, kind: input, shape index: {}]   ;;  %s2872_s6 = inlined_call_operand.hbm [shape: bf16[16,512], index: 6, kind: input, shape index: {}]   ;;  %s2873_s7 = inlined_call_operand.vmem [shape: f32[1,512], index: 7, kind: input, shape index: {}]   ;;  %s2874_s8 = inlined_call_operand.hbm [shape: bf16[512,256], index: 8, kind: input, shape index: {}]   ;;  %s2875_s9 = inlined_call_operand.hbm [shape: f32[1,256], index: 9, kind: input, shape index: {}]   ;;  %s2876_s10 = inlined_call_operand.hbm [shape: bf16[256,128], index: 10, kind: input, shape index: {}]   ;;  %s2877_s11 = inlined_call_operand.hbm [shape: f32[1,128], index: 11, kind: input, shape index: {}]   ;;  %s2878_s12 = inlined_call_operand.vmem [shape: bf16[128,10], index: 12, kind: input, shape index: {}]   ;;  %s2879_s13 = inlined_call_operand.vmem [shape: f32[1,10], index: 13, kind: input, shape index: {}]   ;;  %s2880_s14 = inlined_call_operand.hbm [shape: f32[8,8,32], index: 14, kind: output, shape index: {0}]   ;;  %s2881_s15 = inlined_call_operand.hbm [shape: f32[8,10], index: 15, kind: output, shape index: {1}]  }
   0x1   :  { %22 = vsyncpa [#allocation6], 0 }
   0x2   :  { %23 = vsyncpa [#allocation9], 0 }
   0x3   :  { %24 = vsyncpa [#allocation12], 0 }
   0x4   :  { %25 = vsyncpa [#allocation15], 0 }
   0x5   :  { %26 = vsyncpa [#allocation4], 0 }
   0x6   :  { %27 = vsyncpa [#allocation19], 0  ;;  %s49_s20 = sshll.u32 %s2869_s3, 4  ;;  %s2499_s21 = smov [#allocation5]   ;;  %s50_s20 = int_to_ptr.hbm [resolvable:$true] %s49_s20 }
   0x7   :  { %s51_s22 = sshll.u32 %s2499_s21, 4  ;;  %s73_s25 = sshll.u32 %s2871_s5, 4  ;;  %s52_s22 = int_to_ptr.vmem [resolvable:$true] %s51_s22  ;;  %s74_s25 = int_to_ptr.hbm [resolvable:$true] %s73_s25 }
   0x8   :  { %s2500_s26 = smov 64   ;;  %s2501_s27 = smov 4  }
   0x9   :  { %57 = dma.hbm_to_vmem [thread:$0]  %s50_s20, 256, %s52_s22, [#allocation6], %s2500_s26, %s2500_s26, %s2501_s27  }
   0xa   :  { %s2502_s28 = smov [#allocation8]   ;;  %s2503_s30 = smov 256  }
   0xb   :  { %s75_s29 = sshll.u32 %s2502_s28, 4  ;;  %s2504_s3 = smov 16   ;;  %s76_s29 = int_to_ptr.vmem [resolvable:$true] %s75_s29 }
   0xc   :  { %81 = dma.hbm_to_vmem [thread:$0]  %s74_s25, 1024, %s76_s29, [#allocation9], %s2503_s30, %s2503_s30, %s2504_s3  }
   0xd   :  { %s101_s5 = sshll.u32 %s2874_s8, 4  ;;  %s2505_s18 = smov [#allocation11]   ;;  %s102_s5 = int_to_ptr.hbm [resolvable:$true] %s101_s5 }
   0xe   :  { %s103_s19 = sshll.u32 %s2505_s18, 4  ;;  %s125_s22 = sshll.u32 %s2876_s10, 4  ;;  %s104_s19 = int_to_ptr.vmem [resolvable:$true] %s103_s19  ;;  %s126_s22 = int_to_ptr.hbm [resolvable:$true] %s125_s22 }
   0xf   :  { %s2506_s23 = smov 128   ;;  %s2507_s24 = smov 8  }
  0x10   :  { %109 = dma.hbm_to_vmem [thread:$0]  %s102_s5, 8192, %s104_s19, [#allocation12], %s2506_s23, %s2506_s23, %s2507_s24  }
  0x11   :  { %s2508_s25 = smov [#allocation14]   ;;  %s36_s8 = sshll.u32 %s2868_s2, 4  ;;  %s37_s8 = int_to_ptr.hbm [resolvable:$true] %s36_s8 }
  0x12   :  { %s127_s28 = sshll.u32 %s2508_s25, 4  ;;  %s63_s18 = sshll.u32 %s2870_s4, 4  ;;  %s128_s28 = int_to_ptr.vmem [resolvable:$true] %s127_s28  ;;  %s64_s18 = int_to_ptr.hbm [resolvable:$true] %s63_s18 }
  0x13   :  { %133 = dma.hbm_to_vmem [thread:$0]  %s126_s22, 2048, %s128_s28, [#allocation15], %s2500_s26, %s2500_s26, %s2501_s27  }
  0x14   :  { %s2509_s21 = smov [#allocation2]   ;;  %s2510_s5 = smov [#allocation7]  }
  0x15   :  { %s38_s20 = sshll.u32 %s2509_s21, 4  ;;  %s65_s2 = sshll.u32 %s2510_s5, 4  ;;  %s39_s20 = int_to_ptr.vmem [resolvable:$true] %s38_s20  ;;  %s66_s2 = int_to_ptr.vmem [resolvable:$true] %s65_s2 }
  0x16   :  { %44 = dma.hbm_to_vmem [thread:$0]  %s37_s8, 128, %s39_s20, [#allocation3], %s2500_s26, %s2500_s26, %s2501_s27  }
  0x17   :  { %s86_s29 = sshll.u32 %s2872_s6, 4  ;;  %s115_s4 = sshll.u32 %s2875_s9, 4  ;;  %s87_s29 = int_to_ptr.hbm [resolvable:$true] %s86_s29  ;;  %s116_s4 = int_to_ptr.hbm [resolvable:$true] %s115_s4 }
  0x18   :  { %68 = dma.hbm_to_vmem [thread:$0]  %s64_s18, 16, %s66_s2, [#allocation6]  }
  0x19   :  { %s2511_s16 = smov [#allocation10]   ;;  %s2512_s27 = smov [#allocation13]  }
  0x1a   :  { %s88_s10 = sshll.u32 %s2511_s16, 4  ;;  %s117_s8 = sshll.u32 %s2512_s27, 4  ;;  %s89_s10 = int_to_ptr.vmem [resolvable:$true] %s88_s10  ;;  %s118_s8 = int_to_ptr.vmem [resolvable:$true] %s117_s8 }
  0x1b   :  { %94 = dma.hbm_to_vmem [thread:$0]  %s87_s29, 512, %s89_s10, [#allocation9], %s2503_s30, %s2503_s30, %s2504_s3  }
  0x1c   :  { %s139_s6 = sshll.u32 %s2877_s11, 4  ;;  %s2513_s18 = smov [#allocation16]   ;;  %s140_s6 = int_to_ptr.hbm [resolvable:$true] %s139_s6 }
  0x1d   :  { %120 = dma.hbm_to_vmem [thread:$0]  %s116_s4, 32, %s118_s8, [#allocation12]  }
  0x1e   :  { %s141_s20 = sshll.u32 %s2513_s18, 4  ;;  %s142_s20 = int_to_ptr.vmem [resolvable:$true] %s141_s20 }
  0x1f   :  { %144 = dma.hbm_to_vmem [thread:$0]  %s140_s6, 16, %s142_s20, [#allocation15]  }
  0x20   :  { %2485 = dma.done.wait [#allocation3], 128  }
  0x21   :  { %2486 = vsyncadd [#allocation3], 4294967168 }
  0x22   :  { %2487 = dma.done.wait [#allocation6], 272  }
  0x23   :  { %2488 = vsyncadd [#allocation6], 4294967024 }
  0x24   :  { %2489 = dma.done.wait [#allocation9], 1536  }
  0x25   :  { %2490 = vsyncadd [#allocation9], 4294965760 }
  0x26   :  { %2491 = dma.done.wait [#allocation12], 8224  }
  0x27   :  { %2492 = vsyncadd [#allocation12], 4294959072 }
  0x28   :  { %2493 = dma.done.wait [#allocation15], 2064  }
  0x29   :  { %2494 = vsyncadd [#allocation15], 4294965232  ;;  %v2065_v0 = vld [vmem:[#allocation10 + $0x4] sm:$0xf]  ;;  %v1645_v1 = vld [vmem:[#allocation10 + $0x10] sm:$0xf0] }
  0x2a   :  { %v252_v2 = vld [vmem:[%s2867_s1] sm:$0xff]  ;;  %v1648_v3 = vor.u32 %v2065_v0, %v1645_v1  ;;  %v2646_v4 = vld [vmem:[#allocation5 + $0x8] sm:$0xff]  ;;  %v187_v8 = vld [vmem:[%s2866_s0 + $0x8] sm:$0xff]  ;;  %vm210_vm0 = vcmask 130048   ;;  %v2514_v11 = vmov 0   ;;  %s2515_s1 = smov 32  }
  0x2b   :  { %v2064_v5 = vld [vmem:[#allocation2] sm:$0xff]  ;;  %v2648_v6 = vpack.c.bf16 %v252_v2, %v252_v2  ;;  %v2657_v10 = vld [vmem:[#allocation5] sm:$0xff]  ;;  %v2669_v14 = vld [vmem:[#allocation7] ss:$0 sm:$0xff]  ;;  %vm359_vm1 = vcmask 261120   ;;  %s2516_s4 = smov [#allocation17]  }
  0x2c   :  { %v186_v7 = vld [vmem:[%s2866_s0] sm:$0xff]  ;;  %311 = vmatpush.bf16.msra.mxu2 %v1648_v3  ;;  %230 = vmatpush.bf16.msra.mxu0 %v2064_v5  ;;  %v2068_v30 = vld [vmem:[#allocation10 + $0x14] sm:$0xf0]  ;;  %v1643_v52 = vld [vmem:[#allocation10] sm:$0xf]  ;;  %s1598_s16 = sshll.u32 %s2516_s4, 4  ;;  %s1599_s16 = int_to_ptr.vmem [resolvable:$true] %s1598_s16 }
  0x2d   :  { %v194_v9 = vpack.c.bf16 %v187_v8, %v186_v7  ;;  %v1651_v29 = vld [vmem:[#allocation10 + $0x8] sm:$0xf]  ;;  %v2067_v53 = vld [vmem:[#allocation10 + $0xc] sm:$0xf0]  ;;  %v2066_v54 = vld [vmem:[#allocation10 + $0xc] sm:$0xf] }
  0x2e   :  { %v1652_v31 = vor.u32 %v2068_v30, %v1651_v29  ;;  %v1644_v55 = vor.u32 %v2067_v53, %v1643_v52  ;;  %v1653_v56 = vld [vmem:[#allocation10 + $0x18] sm:$0xf0]  ;;  %s1600_s8 = sshll.u32 %s2880_s14, 4  ;;  %s2517_s21 = smov [#allocation18]   ;;  %vm1592_vm2 = vcmask 80896   ;;  %s1601_s8 = int_to_ptr.hbm [resolvable:$true] %s1600_s8 }
  0x2f   :  { %1658 = vmatmul.msk.bf16.vlgmr.msra.gmra.mxu2 %vm210_vm0, %v2648_v6  ;;  %1637 = vmatmul.msk.bf16.vlgmr.msra.gmra.mxu0 %vm210_vm0, %v194_v9  ;;  %v188_v57 = vld [vmem:[%s2866_s0 + $0x10] sm:$0xff]  ;;  %v189_v58 = vld [vmem:[%s2866_s0 + $0x18] sm:$0xff]  ;;  %v1656_v59 = vor.u32 %v2066_v54, %v1653_v56  ;;  %s1614_s6 = sshll.u32 %s2881_s15, 4  ;;  %s1615_s6 = int_to_ptr.hbm [resolvable:$true] %s1614_s6 }
  0x30   :  { %369 = vmatpush.bf16.msrb.mxu2 %v2646_v4  ;;  %324 = vmatpush.bf16.msra.mxu3 %v1652_v31  ;;  %v195_v60 = vpack.c.bf16 %v189_v58, %v188_v57 }
  0x31   :  { %298 = vmatpush.bf16.msra.mxu1 %v1644_v55 }
  0x33   :  { %1659 = vmatmul.msk.bf16.vlgmr.msra.gmra.mxu3 %vm210_vm0, %v2648_v6 }
  0x34   :  { %370 = vmatpush.bf16.msrb.mxu2 %v2657_v10  ;;  %415 = vmatpush.bf16.msrb.mxu3 %v2646_v4 }
  0x35   :  { %337 = vmatpush.bf16.msrb.mxu1 %v1656_v59 }
  0x36   :  { %1657 = vmatmul.msk.bf16.vlgmr.msra.gmra.mxu1 %vm210_vm0, %v2648_v6 }
  0x38   :  { %509 = vmatpush.bf16.msra.mxu2 %v2646_v4  ;;  %416 = vmatpush.bf16.msrb.mxu3 %v2657_v10 }
  0x39   :  { %462 = vmatpush.bf16.msra.mxu1 %v2646_v4 }
  0x3c   :  { %510 = vmatpush.bf16.msra.mxu2 %v2657_v10  ;;  %556 = vmatpush.bf16.msra.mxu3 %v2646_v4 }
  0x3d   :  { %463 = vmatpush.bf16.msra.mxu1 %v2657_v10 }
  0x3f   :  { %371 = vmatmul.bf16.vlgmr.msrb.gmra.mxu2 %v2514_v11  ;;  %1638 = vmatmul.msk.bf16.gmra.mxu0 %vm210_vm0, %v195_v60 }
  0x40   :  { %650 = vmatpush.bf16.msrb.mxu2 %v2646_v4  ;;  %557 = vmatpush.bf16.msra.mxu3 %v2657_v10 }
  0x44   :  { %651 = vmatpush.bf16.msrb.mxu2 %v2657_v10 }
  0x46   :  { %1660 = vmatmul.msk.bf16.vlgmr.msrb.gmra.mxu1 %vm210_vm0, %v2648_v6 }
  0x47   :  { %603 = vmatpush.bf16.msrb.mxu1 %v2646_v4 }
  0x4b   :  { %604 = vmatpush.bf16.msrb.mxu1 %v2657_v10 }
  0xac   :  { %v232_v15 = vpop.f32.mrf.mxu0 }
  0xad   :  { %v233_v16 = vadd.f32 %v2669_v14, %v232_v15 }
  0xb2   :  { %v2667_v12 = vpop.f32.mrf.mxu2 }
  0xb3   :  { %v2715_v0 = vpop.f32.mrf.mxu1 }
  0xb4   :  { %v234_v38 = vpop.f32.mrf.mxu0 }
  0xb5   :  { %v235_v39 = vadd.f32 %v2669_v14, %v234_v38 }
  0xb6   :  { %v2686_v35 = vpop.f32.mrf.mxu3 }
  0xba   :  { %v315_v13 = vpop.f32.mrf.mxu2 }
  0xbb   :  { %v302_v1 = vpop.f32.mrf.mxu1 }
  0xbe   :  { %v328_v36 = vpop.f32.mrf.mxu3 }
  0xc2   :  { %v372_v17 = vpop.f32.mrf.mxu2 }
  0xc3   :  { %v376_v18 = vadd.f32 %v372_v17, %v233_v16  ;;  %v2718_v3 = vpop.f32.mrf.mxu1 }
  0xc5   :  { %2189 = vtanh.f32 %v376_v18 }
  0xca   :  { %v374_v19 = vpop.f32.mrf.mxu2 }
  0xcb   :  { %v2190_v20 = vpop.eup %2189  ;;  %v341_v5 = vpop.f32.mrf.mxu1 }
  0xcc   :  { %382 = vrot.lane.b32.xlu0 %v2190_v20, %s2515_s1  ;;  %v378_v21 = vmul.f32 0.5, %v2190_v20 }
  0xce   :  { %v379_v22 = vadd.f32 0.5, %v378_v21 }
  0xd0   :  { %v380_v25 = vmul.f32 0.0, %v379_v22 }
 0x13e   :  { %v383_v23 = vpop.permute.xlu0 %382 }
 0x13f   :  { %v385_v24 = vmul.f32 %v383_v23, %v379_v22 }
 0x141   :  { %387 = vrot.lane.b32.xlu0 %v385_v24, %s2515_s1 }
 0x1b3   :  { %v388_v26 = vpop.permute.xlu0 %387 }
 0x1b4   :  { %v390_v27 = vadd.f32 %v388_v26, %v380_v25 }
 0x1b6   :  { %2191 = vtanh.f32 %v390_v27 }
 0x1bc   :  { %v2192_v28 = vpop.eup %2191 }
 0x1bd   :  { %393 = vrot.lane.b32.xlu1 %v2192_v28, %s2515_s1 }
 0x22f   :  { %v394_v32 = vpop.permute.xlu1 %393 }
 0x230   :  { %v2681_v33 = vmul.f32 %v394_v32, %v379_v22 }
 0x232   :  { %v402_v34 = vpack.c.bf16 %v2681_v33, %v2681_v33 }
 0x234   :  { %404 = vrot.lane.b32.xlu1 %v402_v34, %s2500_s26 }
 0x2a6   :  { %v405_v37 = vpop.permute.xlu1 %404 }
 0x2a7   :  { %1669 = vmatmul.msk.bf16.vlgmr.msrb.gmra.mxu3 %vm359_vm1, %v405_v37 }
 0x2a8   :  { %697 = vmatpush.bf16.msrb.mxu3 %v2646_v4  ;;  %v237_v4 = vpop.f32.mrf.mxu0 }
 0x2a9   :  { %v238_v6 = vadd.f32 %v2669_v14, %v237_v4 }
 0x2ac   :  { %698 = vmatpush.bf16.msrb.mxu3 %v2657_v10 }
 0x2b0   :  { %v239_v25 = vpop.f32.mrf.mxu0 }
 0x2b1   :  { %v240_v26 = vadd.f32 %v2669_v14, %v239_v25 }
 0x32a   :  { %v418_v40 = vpop.f32.mrf.mxu3 }
 0x32b   :  { %v422_v41 = vadd.f32 %v418_v40, %v235_v39 }
 0x32d   :  { %2193 = vtanh.f32 %v422_v41  ;;  %v190_v41 = vld [vmem:[%s2866_s0 + $0x20] sm:$0xff] }
 0x332   :  { %v420_v42 = vpop.f32.mrf.mxu3 }
 0x333   :  { %v2194_v43 = vpop.eup %2193  ;;  %v191_v42 = vld [vmem:[%s2866_s0 + $0x28] sm:$0xff] }
 0x334   :  { %428 = vrot.lane.b32.xlu2 %v2194_v43, %s2515_s1  ;;  %v424_v44 = vmul.f32 0.5, %v2194_v43  ;;  %v196_v43 = vpack.c.bf16 %v191_v42, %v190_v41 }
 0x336   :  { %v425_v45 = vadd.f32 0.5, %v424_v44  ;;  %1639 = vmatmul.msk.bf16.gmra.mxu0 %vm210_vm0, %v196_v43 }
 0x338   :  { %v426_v48 = vmul.f32 %v425_v45, %v390_v27 }
 0x38e   :  { %v429_v46 = vpop.permute.xlu2 %428 }
 0x38f   :  { %v431_v47 = vmul.f32 %v429_v46, %v425_v45 }
 0x391   :  { %433 = vrot.lane.b32.xlu2 %v431_v47, %s2515_s1 }
 0x3eb   :  { %v434_v49 = vpop.permute.xlu2 %433 }
 0x3ec   :  { %v436_v50 = vadd.f32 %v434_v49, %v426_v48  ;;  %v242_v48 = vpop.f32.mrf.mxu0 }
 0x3ed   :  { %v243_v49 = vadd.f32 %v2669_v14, %v242_v48 }
 0x3ee   :  { %2195 = vtanh.f32 %v436_v50 }
 0x3f4   :  { %v2196_v51 = vpop.eup %2195  ;;  %v244_v4 = vpop.f32.mrf.mxu0 }
 0x3f5   :  { %439 = vrot.lane.b32.xlu0 %v2196_v51, %s2515_s1 }
 0x467   :  { %v440_v61 = vpop.permute.xlu0 %439 }
 0x468   :  { %v2710_v62 = vmul.f32 %v440_v61, %v425_v45 }
 0x46a   :  { %v449_v63 = vpack.c.bf16 %v2710_v62, %v2710_v62 }
 0x46c   :  { %451 = vrot.lane.b32.xlu1 %v449_v63, %s2500_s26 }
 0x4de   :  { %v452_v2 = vpop.permute.xlu1 %451 }
 0x4df   :  { %1670 = vmatmul.msk.bf16.vlgmr.msra.gmra.mxu1 %vm359_vm1, %v452_v2 }
 0x55c   :  { %v465_v7 = vpop.f32.mrf.mxu1 }
 0x55d   :  { %v469_v8 = vadd.f32 %v465_v7, %v238_v6  ;;  %v245_v6 = vadd.f32 %v2669_v14, %v244_v4  ;;  %v2077_v4 = vld [vmem:[#allocation8 + $0x2c] sm:$0xf0] }
 0x55f   :  { %2197 = vtanh.f32 %v469_v8 }
 0x564   :  { %v467_v9 = vpop.f32.mrf.mxu1 }
 0x565   :  { %v2198_v10 = vpop.eup %2197 }
 0x566   :  { %475 = vrot.lane.b32.xlu2 %v2198_v10, %s2515_s1  ;;  %v471_v11 = vmul.f32 0.5, %v2198_v10 }
 0x568   :  { %v472_v13 = vadd.f32 0.5, %v471_v11 }
 0x56a   :  { %v473_v17 = vmul.f32 %v472_v13, %v436_v50 }
 0x5c0   :  { %v476_v15 = vpop.permute.xlu2 %475 }
 0x5c1   :  { %v478_v16 = vmul.f32 %v476_v15, %v472_v13 }
 0x5c3   :  { %480 = vrot.lane.b32.xlu0 %v478_v16, %s2515_s1 }
 0x635   :  { %v481_v18 = vpop.permute.xlu0 %480 }
 0x636   :  { %v483_v19 = vadd.f32 %v481_v18, %v473_v17 }
 0x638   :  { %2199 = vtanh.f32 %v483_v19 }
 0x63e   :  { %v2200_v20 = vpop.eup %2199 }
 0x63f   :  { %486 = vrot.lane.b32.xlu1 %v2200_v20, %s2515_s1 }
 0x6b1   :  { %v487_v21 = vpop.permute.xlu1 %486 }
 0x6b2   :  { %v2724_v22 = vmul.f32 %v487_v21, %v472_v13  ;;  %v192_v21 = vld [vmem:[%s2866_s0 + $0x30] sm:$0xff] }
 0x6b4   :  { %v496_v23 = vpack.c.bf16 %v2724_v22, %v2724_v22 }
 0x6b6   :  { %498 = vrot.lane.b32.xlu2 %v496_v23, %s2500_s26  ;;  %v193_v23 = vld [vmem:[%s2866_s0 + $0x38] sm:$0xff]  ;;  %s1612_s0 = sshll.u32 %s2517_s21, 4  ;;  %s1613_s0 = int_to_ptr.vmem [resolvable:$true] %s1612_s0 }
 0x710   :  { %v499_v24 = vpop.permute.xlu2 %498 }
 0x711   :  { %1671 = vmatmul.msk.bf16.vlgmr.msra.gmra.mxu2 %vm359_vm1, %v499_v24  ;;  %v197_v24 = vpack.c.bf16 %v193_v23, %v192_v21 }
 0x713   :  { %1640 = vmatmul.msk.bf16.gmra.mxu0 %vm210_vm0, %v197_v24 }
 0x794   :  { %v512_v27 = vpop.f32.mrf.mxu2 }
 0x795   :  { %v516_v28 = vadd.f32 %v512_v27, %v240_v26 }
 0x797   :  { %2201 = vtanh.f32 %v516_v28 }
 0x79c   :  { %v514_v29 = vpop.f32.mrf.mxu2 }
 0x79d   :  { %v2202_v30 = vpop.eup %2201  ;;  %v247_v29 = vpop.f32.mrf.mxu0 }
 0x79e   :  { %522 = vrot.lane.b32.xlu0 %v2202_v30, %s2515_s1  ;;  %v518_v31 = vmul.f32 0.5, %v2202_v30  ;;  %v248_v30 = vadd.f32 %v2669_v14, %v247_v29  ;;  %v2076_v29 = vld [vmem:[#allocation8 + $0x2c] sm:$0xf] }
 0x7a0   :  { %v519_v32 = vadd.f32 0.5, %v518_v31 }
 0x7a2   :  { %v520_v37 = vmul.f32 %v519_v32, %v483_v19 }
 0x810   :  { %v523_v34 = vpop.permute.xlu0 %522 }
 0x811   :  { %v525_v36 = vmul.f32 %v523_v34, %v519_v32 }
 0x813   :  { %527 = vrot.lane.b32.xlu1 %v525_v36, %s2515_s1 }
 0x885   :  { %v528_v38 = vpop.permute.xlu1 %527 }
 0x886   :  { %v530_v39 = vadd.f32 %v528_v38, %v520_v37 }
 0x888   :  { %2203 = vtanh.f32 %v530_v39 }
 0x88e   :  { %v2204_v40 = vpop.eup %2203 }
 0x88f   :  { %533 = vrot.lane.b32.xlu2 %v2204_v40, %s2515_s1 }
 0x8e9   :  { %v534_v44 = vpop.permute.xlu2 %533 }
 0x8ea   :  { %v2741_v45 = vmul.f32 %v534_v44, %v519_v32 }
 0x8ec   :  { %v543_v46 = vpack.c.bf16 %v2741_v45, %v2741_v45 }
 0x8ee   :  { %545 = vrot.lane.b32.xlu0 %v543_v46, %s2500_s26 }
 0x960   :  { %v546_v47 = vpop.permute.xlu0 %545 }
 0x961   :  { %1672 = vmatmul.msk.bf16.vlgmr.msra.gmra.mxu3 %vm359_vm1, %v546_v47 }
 0x9e4   :  { %v559_v50 = vpop.f32.mrf.mxu3 }
 0x9e5   :  { %v563_v51 = vadd.f32 %v559_v50, %v243_v49  ;;  %v249_v50 = vpop.f32.mrf.mxu0 }
 0x9e7   :  { %2205 = vtanh.f32 %v563_v51  ;;  %v250_v51 = vadd.f32 %v2669_v14, %v249_v50  ;;  %v2092_v50 = vld [vmem:[#allocation11 + $0x64] sm:$0xf0] }
 0x9ec   :  { %v561_v52 = vpop.f32.mrf.mxu3 }
 0x9ed   :  { %v2206_v53 = vpop.eup %2205 }
 0x9ee   :  { %569 = vrot.lane.b32.xlu1 %v2206_v53, %s2515_s1  ;;  %v565_v54 = vmul.f32 0.5, %v2206_v53 }
 0x9f0   :  { %v566_v55 = vadd.f32 0.5, %v565_v54 }
 0x9f2   :  { %v567_v58 = vmul.f32 %v566_v55, %v530_v39 }
 0xa60   :  { %v570_v56 = vpop.permute.xlu1 %569 }
 0xa61   :  { %v572_v57 = vmul.f32 %v570_v56, %v566_v55 }
 0xa63   :  { %574 = vrot.lane.b32.xlu2 %v572_v57, %s2515_s1 }
 0xabd   :  { %v575_v59 = vpop.permute.xlu2 %574 }
 0xabe   :  { %v577_v60 = vadd.f32 %v575_v59, %v567_v58 }
 0xac0   :  { %2207 = vtanh.f32 %v577_v60 }
 0xac6   :  { %v2208_v61 = vpop.eup %2207 }
 0xac7   :  { %580 = vrot.lane.b32.xlu0 %v2208_v61, %s2515_s1 }
 0xb39   :  { %v581_v63 = vpop.permute.xlu0 %580 }
 0xb3a   :  { %v2751_v1 = vmul.f32 %v581_v63, %v566_v55 }
 0xb3c   :  { %v590_v2 = vpack.c.bf16 %v2751_v1, %v2751_v1 }
 0xb3e   :  { %592 = vrot.lane.b32.xlu1 %v590_v2, %s2500_s26 }
 0xbb0   :  { %v593_v5 = vpop.permute.xlu1 %592 }
 0xbb1   :  { %1673 = vmatmul.msk.bf16.vlgmr.msrb.gmra.mxu1 %vm359_vm1, %v593_v5 }
 0xc2e   :  { %v606_v7 = vpop.f32.mrf.mxu1 }
 0xc2f   :  { %v610_v8 = vadd.f32 %v606_v7, %v245_v6  ;;  %v1678_v6 = vld [vmem:[#allocation8] sm:$0xf] }
 0xc31   :  { %2209 = vtanh.f32 %v610_v8  ;;  %v2073_v8 = vld [vmem:[#allocation8 + $0xc] sm:$0xf0] }
 0xc36   :  { %v608_v9 = vpop.f32.mrf.mxu1 }
 0xc37   :  { %v2210_v10 = vpop.eup %2209  ;;  %v2075_v9 = vld [vmem:[#allocation8 + $0x24] sm:$0xf] }
 0xc38   :  { %616 = vrot.lane.b32.xlu2 %v2210_v10, %s2515_s1  ;;  %v612_v11 = vmul.f32 0.5, %v2210_v10  ;;  %v1696_v10 = vld [vmem:[#allocation8 + $0x30] sm:$0xf0] }
 0xc3a   :  { %v613_v13 = vadd.f32 0.5, %v612_v11  ;;  %v1699_v11 = vor.u32 %v2075_v9, %v1696_v10  ;;  %v1802_v9 = vld [vmem:[#allocation11 + $0xb0] sm:$0xf]  ;;  %v2102_v10 = vld [vmem:[#allocation11 + $0xb4] sm:$0xf0] }
 0xc3c   :  { %v614_v17 = vmul.f32 %v613_v13, %v577_v60  ;;  %805 = vmatpush.bf16.msra.mxu1 %v1699_v11 }
 0xc92   :  { %v617_v15 = vpop.permute.xlu2 %616 }
 0xc93   :  { %v619_v16 = vmul.f32 %v617_v15, %v613_v13  ;;  %v2078_v15 = vld [vmem:[#allocation8 + $0x34] sm:$0xf0] }
 0xc95   :  { %621 = vrot.lane.b32.xlu0 %v619_v16, %s2515_s1  ;;  %v2071_v16 = vld [vmem:[#allocation8 + $0x4] sm:$0xf] }
 0xd07   :  { %v622_v18 = vpop.permute.xlu0 %621 }
 0xd08   :  { %v624_v19 = vadd.f32 %v622_v18, %v614_v17  ;;  %v1679_v17 = vor.u32 %v2073_v8, %v1678_v6  ;;  %v1680_v18 = vld [vmem:[#allocation8 + $0x10] sm:$0xf0]  ;;  %v2120_v6 = vld [vmem:[#allocation11 + $0x144] sm:$0xf0]  ;;  %v2142_v8 = vld [vmem:[#allocation11 + $0x1f4] sm:$0xf0] }
 0xd09   :  { %v1683_v21 = vor.u32 %v2071_v16, %v1680_v18 }
 0xd0a   :  { %2211 = vtanh.f32 %v624_v19 }
 0xd0b   :  { %806 = vmatpush.bf16.msra.mxu1 %v1683_v21  ;;  %v2118_v21 = vld [vmem:[#allocation11 + $0x134] sm:$0xf0] }
 0xd10   :  { %v2212_v20 = vpop.eup %2211 }
 0xd11   :  { %627 = vrot.lane.b32.xlu1 %v2212_v20, %s2515_s1  ;;  %v2074_v20 = vld [vmem:[#allocation8 + $0x14] sm:$0xf0] }
 0xd83   :  { %v628_v25 = vpop.permute.xlu1 %627 }
 0xd84   :  { %v2768_v26 = vmul.f32 %v628_v25, %v613_v13  ;;  %v1702_v13 = vld [vmem:[#allocation8 + $0x28] sm:$0xf] }
 0xd86   :  { %v637_v27 = vpack.c.bf16 %v2768_v26, %v2768_v26 }
 0xd88   :  { %639 = vrot.lane.b32.xlu2 %v637_v27, %s2500_s26 }
 0xde2   :  { %v640_v28 = vpop.permute.xlu2 %639 }
 0xde3   :  { %1674 = vmatmul.msk.bf16.vlgmr.msrb.gmra.mxu2 %vm359_vm1, %v640_v28 }
 0xe66   :  { %v653_v31 = vpop.f32.mrf.mxu2 }
 0xe67   :  { %v657_v32 = vadd.f32 %v653_v31, %v248_v30  ;;  %v1704_v30 = vld [vmem:[#allocation8 + $0x38] sm:$0xf0] }
 0xe68   :  { %v1707_v31 = vor.u32 %v2076_v29, %v1704_v30  ;;  %v1730_v29 = vld [vmem:[#allocation11 + $0x20] sm:$0xf]  ;;  %v2084_v30 = vld [vmem:[#allocation11 + $0x24] sm:$0xf0] }
 0xe69   :  { %2213 = vtanh.f32 %v657_v32  ;;  %v2072_v32 = vld [vmem:[#allocation8 + $0xc] sm:$0xf] }
 0xe6e   :  { %v655_v34 = vpop.f32.mrf.mxu2 }
 0xe6f   :  { %v2214_v36 = vpop.eup %2213  ;;  %v1688_v34 = vld [vmem:[#allocation8 + $0x18] sm:$0xf0] }
 0xe70   :  { %663 = vrot.lane.b32.xlu0 %v2214_v36, %s2515_s1  ;;  %v659_v37 = vmul.f32 0.5, %v2214_v36  ;;  %v1691_v36 = vor.u32 %v2072_v32, %v1688_v34 }
 0xe72   :  { %v660_v38 = vadd.f32 0.5, %v659_v37  ;;  %v1834_v37 = vld [vmem:[#allocation11 + $0xf0] sm:$0xf] }
 0xe74   :  { %v661_v41 = vmul.f32 %v660_v38, %v624_v19  ;;  %v1686_v19 = vld [vmem:[#allocation8 + $0x8] sm:$0xf] }
 0xee2   :  { %v664_v39 = vpop.permute.xlu0 %663 }
 0xee3   :  { %v666_v40 = vmul.f32 %v664_v39, %v660_v38  ;;  %v1770_v39 = vld [vmem:[#allocation11 + $0x70] sm:$0xf] }
 0xee5   :  { %668 = vrot.lane.b32.xlu1 %v666_v40, %s2515_s1 }
 0xf57   :  { %v669_v42 = vpop.permute.xlu1 %668 }
 0xf58   :  { %v671_v43 = vadd.f32 %v669_v42, %v661_v41  ;;  %v2094_v41 = vld [vmem:[#allocation11 + $0x74] sm:$0xf0]  ;;  %v2108_v42 = vld [vmem:[#allocation11 + $0xe4] sm:$0xf0] }
 0xf5a   :  { %2215 = vtanh.f32 %v671_v43 }
 0xf60   :  { %v2216_v44 = vpop.eup %2215 }
 0xf61   :  { %674 = vrot.lane.b32.xlu2 %v2216_v44, %s2515_s1  ;;  %v1898_v44 = vld [vmem:[#allocation11 + $0x170] sm:$0xf] }
 0xfbb   :  { %v675_v46 = vpop.permute.xlu2 %674 }
 0xfbc   :  { %v677_v47 = vmul.f32 %v675_v46, %v660_v38  ;;  %v2110_v38 = vld [vmem:[#allocation11 + $0xf4] sm:$0xf0] }
 0xfbd   :  { %v1835_v40 = vor.u32 %v2110_v38, %v1834_v37  ;;  %v2126_v46 = vld [vmem:[#allocation11 + $0x174] sm:$0xf0]  ;;  %v1946_v37 = vld [vmem:[#allocation11 + $0x1d0] sm:$0xf] }
 0xfbe   :  { %v684_v48 = vpack.c.bf16 %v677_v47, %v677_v47  ;;  %v2138_v38 = vld [vmem:[#allocation11 + $0x1d4] sm:$0xf0] }
 0xfbf   :  { %1253 = vmatpush.bf16.msrb.mxu1 %v1835_v40  ;;  %v2098_v40 = vld [vmem:[#allocation11 + $0x94] sm:$0xf0] }
 0xfc0   :  { %686 = vrot.lane.b32.xlu0 %v684_v48, %s2500_s26  ;;  %v1818_v48 = vld [vmem:[#allocation11 + $0xd0] sm:$0xf] }
0x1032   :  { %v687_v49 = vpop.permute.xlu0 %686 }
0x1033   :  { %1675 = vmatmul.msk.bf16.vlgmr.msrb.gmra.mxu3 %vm359_vm1, %v687_v49  ;;  %v1762_v49 = vld [vmem:[#allocation11 + $0x60] sm:$0xf] }
0x10b6   :  { %v700_v52 = vpop.f32.mrf.mxu3 }
0x10b7   :  { %v704_v53 = vadd.f32 %v700_v52, %v250_v51  ;;  %v2106_v51 = vld [vmem:[#allocation11 + $0xd4] sm:$0xf0]  ;;  %v1763_v52 = vor.u32 %v2092_v50, %v1762_v49  ;;  %v1938_v49 = vld [vmem:[#allocation11 + $0x1c0] sm:$0xf]  ;;  %v2136_v50 = vld [vmem:[#allocation11 + $0x1c4] sm:$0xf0] }
0x10b9   :  { %2217 = vtanh.f32 %v704_v53  ;;  %v1890_v53 = vld [vmem:[#allocation11 + $0x160] sm:$0xf] }
0x10be   :  { %v702_v54 = vpop.f32.mrf.mxu3 }
0x10bf   :  { %v2218_v55 = vpop.eup %2217  ;;  %v2124_v54 = vld [vmem:[#allocation11 + $0x164] sm:$0xf0] }
0x10c0   :  { %710 = vrot.lane.b32.xlu1 %v2218_v55, %s2515_s1  ;;  %v706_v56 = vmul.f32 0.5, %v2218_v55  ;;  %v1891_v55 = vor.u32 %v2124_v54, %v1890_v53  ;;  %v2109_v53 = vld [vmem:[#allocation11 + $0xf4] sm:$0xf]  ;;  %v1836_v54 = vld [vmem:[#allocation11 + $0xf8] sm:$0xf0] }
0x10c2   :  { %v707_v57 = vadd.f32 0.5, %v706_v56  ;;  %v1754_v56 = vld [vmem:[#allocation11 + $0x50] sm:$0xf] }
0x10c4   :  { %v708_v14 = vmul.f32 %v707_v57, %v671_v43  ;;  %v1771_v43 = vor.u32 %v2094_v41, %v1770_v39  ;;  %v1786_v39 = vld [vmem:[#allocation11 + $0x90] sm:$0xf]  ;;  %v1731_v41 = vor.u32 %v2084_v30, %v1730_v29  ;;  %v1922_v30 = vld [vmem:[#allocation11 + $0x1a0] sm:$0xf] }
0x10c6   :  { %1240 = vmatpush.bf16.msrb.mxu0 %v1771_v43  ;;  %v2082_v43 = vld [vmem:[#allocation11 + $0x14] sm:$0xf0] }
0x10ca   :  { %1241 = vmatpush.bf16.msrb.mxu0 %v1763_v52  ;;  %v2096_v52 = vld [vmem:[#allocation11 + $0x84] sm:$0xf0] }
0x1132   :  { %v711_v58 = vpop.permute.xlu1 %710 }
0x1133   :  { %v713_v59 = vmul.f32 %v711_v58, %v707_v57  ;;  %v1882_v58 = vld [vmem:[#allocation11 + $0x150] sm:$0xf] }
0x1135   :  { %715 = vrot.lane.b32.xlu2 %v713_v59, %s2515_s1  ;;  %v2122_v59 = vld [vmem:[#allocation11 + $0x154] sm:$0xf0] }
0x113d   :  { %398 = vrot.lane.b32.xlu2 %v2681_v33, %s2500_s26 }
0x1145   :  { %538 = vrot.lane.b32.xlu2 %v2741_v45, %s2500_s26  ;;  %v1694_v45 = vld [vmem:[#allocation8 + $0x20] sm:$0xf] }
0x1146   :  { %v1695_v7 = vor.u32 %v2077_v4, %v1694_v45  ;;  %v1874_v45 = vld [vmem:[#allocation11 + $0x140] sm:$0xf] }
0x1147   :  { %v1875_v16 = vor.u32 %v2120_v6, %v1874_v45 }
0x1148   :  { %792 = vmatpush.bf16.msra.mxu3 %v1695_v7  ;;  %v1962_v7 = vld [vmem:[#allocation11 + $0x1f0] sm:$0xf] }
0x1149   :  { %v1963_v18 = vor.u32 %v2142_v8, %v1962_v7  ;;  %v2093_v7 = vld [vmem:[#allocation11 + $0x74] sm:$0xf]  ;;  %v1772_v8 = vld [vmem:[#allocation11 + $0x78] sm:$0xf0] }
0x114c   :  { %793 = vmatpush.bf16.msra.mxu3 %v1679_v17  ;;  %v2086_v17 = vld [vmem:[#allocation11 + $0x34] sm:$0xf0] }
0x114d   :  { %679 = vrot.lane.b32.xlu2 %v677_v47, %s2500_s26  ;;  %v1899_v47 = vor.u32 %v2126_v46, %v1898_v44  ;;  %v1850_v44 = vld [vmem:[#allocation11 + $0x110] sm:$0xf]  ;;  %v1947_v46 = vor.u32 %v2138_v38, %v1946_v37  ;;  %v2121_v37 = vld [vmem:[#allocation11 + $0x154] sm:$0xf] }
0x1150   :  { %831 = vmatpush.bf16.msrb.mxu3 %v1707_v31  ;;  %v1858_v31 = vld [vmem:[#allocation11 + $0x120] sm:$0xf] }
0x1154   :  { %832 = vmatpush.bf16.msrb.mxu3 %v1691_v36  ;;  %v2116_v36 = vld [vmem:[#allocation11 + $0x124] sm:$0xf0] }
0x118f   :  { %v716_v60 = vpop.permute.xlu2 %715 }
0x1190   :  { %v718_v61 = vadd.f32 %v716_v60, %v708_v14  ;;  %v1819_v14 = vor.u32 %v2106_v51, %v1818_v48  ;;  %v1810_v60 = vld [vmem:[#allocation11 + $0xc0] sm:$0xf]  ;;  %v2114_v48 = vld [vmem:[#allocation11 + $0x114] sm:$0xf0] }
0x1191   :  { %v1778_v51 = vld [vmem:[#allocation11 + $0x80] sm:$0xf] }
0x1192   :  { %2219 = vtanh.f32 %v718_v61  ;;  %v2104_v61 = vld [vmem:[#allocation11 + $0xc4] sm:$0xf0] }
0x1193   :  { %v1811_v4 = vor.u32 %v2104_v61, %v1810_v60  ;;  %v1842_v60 = vld [vmem:[#allocation11 + $0x100] sm:$0xf]  ;;  %v2112_v61 = vld [vmem:[#allocation11 + $0x104] sm:$0xf0] }
0x1194   :  { %v1843_v45 = vor.u32 %v2112_v61, %v1842_v60  ;;  %v1868_v61 = vld [vmem:[#allocation11 + $0x138] sm:$0xf0] }
0x1197   :  { %v399_v63 = vpop.permute.xlu2 %398 }
0x1198   :  { %v2220_v2 = vpop.eup %2219  ;;  %401 = vst.msk [vmem:[#allocation17] sm:$0xff] %vm359_vm1, %v399_v63 }
0x1199   :  { %721 = vrot.lane.b32.xlu0 %v2220_v2, %s2515_s1  ;;  %v1883_v2 = vor.u32 %v2122_v59, %v1882_v58  ;;  %v2080_v58 = vld [vmem:[#allocation11 + $0x4] sm:$0xf0]  ;;  %v1939_v59 = vor.u32 %v2136_v50, %v1938_v49  ;;  %v1876_v50 = vld [vmem:[#allocation11 + $0x148] sm:$0xf0] }
0x119f   :  { %v539_v5 = vpop.permute.xlu2 %538 }
0x11a0   :  { %542 = vst.msk [vmem:[#allocation17 + $0x18] sm:$0xff] %vm359_vm1, %v539_v5  ;;  %v1746_v5 = vld [vmem:[#allocation11 + $0x40] sm:$0xf] }
0x11a1   :  { %444 = vrot.lane.b32.xlu0 %v2710_v62, %s2500_s26  ;;  %v1703_v62 = vor.u32 %v2078_v15, %v1702_v13  ;;  %v1738_v15 = vld [vmem:[#allocation11 + $0x30] sm:$0xf] }
0x11a3   :  { %818 = vmatpush.bf16.msra.mxu2 %v1703_v62  ;;  %v1866_v62 = vld [vmem:[#allocation11 + $0x130] sm:$0xf] }
0x11a7   :  { %v680_v33 = vpop.permute.xlu2 %679 }
0x11a8   :  { %683 = vst.msk [vmem:[#allocation17 + $0x30] sm:$0xff] %vm359_vm1, %v680_v33  ;;  %v2088_v33 = vld [vmem:[#allocation11 + $0x44] sm:$0xf0] }
0x11a9   :  { %585 = vrot.lane.b32.xlu0 %v2751_v1, %s2500_s26  ;;  %v1687_v1 = vor.u32 %v2074_v20, %v1686_v19  ;;  %v1747_v13 = vor.u32 %v2088_v33, %v1746_v5  ;;  %v1803_v20 = vor.u32 %v2102_v10, %v1802_v9  ;;  %v1828_v5 = vld [vmem:[#allocation11 + $0xe8] sm:$0xf0]  ;;  %v2125_v9 = vld [vmem:[#allocation11 + $0x174] sm:$0xf]  ;;  %v1775_v10 = vor.u32 %v2093_v7, %v1772_v8 }
0x11aa   :  { %v1732_v8 = vld [vmem:[#allocation11 + $0x28] sm:$0xf0] }
0x11ab   :  { %819 = vmatpush.bf16.msra.mxu2 %v1687_v1  ;;  %v1954_v1 = vld [vmem:[#allocation11 + $0x1e0] sm:$0xf] }
0x11af   :  { %1266 = vmatpush.bf16.msrb.mxu2 %v1899_v47  ;;  %v1787_v47 = vor.u32 %v2098_v40, %v1786_v39  ;;  %v1884_v39 = vld [vmem:[#allocation11 + $0x158] sm:$0xf0] }
0x11b0   :  { %v1887_v40 = vor.u32 %v2121_v37, %v1884_v39  ;;  %v2135_v39 = vld [vmem:[#allocation11 + $0x1c4] sm:$0xf] }
0x11b3   :  { %1267 = vmatpush.bf16.msrb.mxu2 %v1891_v55 }
0x11b7   :  { %1268 = vmatpush.bf16.msrb.mxu2 %v1883_v2  ;;  %v2107_v2 = vld [vmem:[#allocation11 + $0xe4] sm:$0xf] }
0x11b8   :  { %v1831_v6 = vor.u32 %v2107_v2, %v1828_v5  ;;  %v1964_v2 = vld [vmem:[#allocation11 + $0x1f8] sm:$0xf0] }
0x11bb   :  { %1269 = vmatpush.bf16.msrb.mxu2 %v1875_v16  ;;  %v1820_v16 = vld [vmem:[#allocation11 + $0xd8] sm:$0xf0] }
0x120b   :  { %v722_v23 = vpop.permute.xlu0 %721 }
0x120c   :  { %v724_v24 = vmul.f32 %v722_v23, %v707_v57  ;;  %v2090_v57 = vld [vmem:[#allocation11 + $0x54] sm:$0xf0]  ;;  %v2140_v23 = vld [vmem:[#allocation11 + $0x1e4] sm:$0xf0] }
0x120d   :  { %v1755_v63 = vor.u32 %v2090_v57, %v1754_v56  ;;  %v1955_v32 = vor.u32 %v2140_v23, %v1954_v1  ;;  %v1851_v56 = vor.u32 %v2114_v48, %v1850_v44  ;;  %v1714_v57 = vld [vmem:[#allocation11] sm:$0xf]  ;;  %v2123_v1 = vld [vmem:[#allocation11 + $0x164] sm:$0xf]  ;;  %v2130_v44 = vld [vmem:[#allocation11 + $0x194] sm:$0xf0] }
0x120e   :  { %726 = vrot.lane.b32.xlu0 %v724_v24, %s2500_s26  ;;  %v731_v25 = vpack.c.bf16 %v724_v24, %v724_v24  ;;  %v1794_v24 = vld [vmem:[#allocation11 + $0xa0] sm:$0xf]  ;;  %v1715_v33 = vor.u32 %v2080_v58, %v1714_v57  ;;  %v2119_v48 = vld [vmem:[#allocation11 + $0x144] sm:$0xf]  ;;  %v2085_v58 = vld [vmem:[#allocation11 + $0x34] sm:$0xf] }
0x120f   :  { %1242 = vmatpush.bf16.msrb.mxu0 %v1755_v63  ;;  %v1839_v63 = vor.u32 %v2109_v53, %v1836_v54  ;;  %v1796_v53 = vld [vmem:[#allocation11 + $0xa8] sm:$0xf0] }
0x1210   :  { %741 = vrot.lane.b32.xlu1 %v731_v25, %s2500_s26  ;;  %v2100_v25 = vld [vmem:[#allocation11 + $0xa4] sm:$0xf0] }
0x1211   :  { %v1795_v34 = vor.u32 %v2100_v25, %v1794_v24  ;;  %v1892_v24 = vld [vmem:[#allocation11 + $0x168] sm:$0xf0] }
0x1212   :  { %v1895_v25 = vor.u32 %v2123_v1, %v1892_v24  ;;  %v1724_v1 = vld [vmem:[#allocation11 + $0x18] sm:$0xf0] }
0x1213   :  { %v445_v27 = vpop.permute.xlu0 %444  ;;  %1243 = vmatpush.bf16.msrb.mxu0 %v1747_v13 }
0x1214   :  { %448 = vst.msk [vmem:[#allocation17 + $0x8] sm:$0xff] %vm359_vm1, %v445_v27  ;;  %v1739_v27 = vor.u32 %v2086_v17, %v1738_v15  ;;  %v2105_v15 = vld [vmem:[#allocation11 + $0xd4] sm:$0xf] }
0x1215   :  { %v1823_v17 = vor.u32 %v2105_v15, %v1820_v16  ;;  %v2139_v15 = vld [vmem:[#allocation11 + $0x1e4] sm:$0xf]  ;;  %v1956_v16 = vld [vmem:[#allocation11 + $0x1e8] sm:$0xf0] }
0x1217   :  { %1244 = vmatpush.bf16.msrb.mxu0 %v1739_v27  ;;  %v2103_v27 = vld [vmem:[#allocation11 + $0xc4] sm:$0xf] }
0x1218   :  { %491 = vrot.lane.b32.xlu1 %v2724_v22, %s2500_s26  ;;  %v1826_v22 = vld [vmem:[#allocation11 + $0xe0] sm:$0xf] }
0x121b   :  { %v586_v28 = vpop.permute.xlu0 %585  ;;  %1245 = vmatpush.bf16.msrb.mxu0 %v1731_v41  ;;  %v2101_v41 = vld [vmem:[#allocation11 + $0xb4] sm:$0xf] }
0x121c   :  { %589 = vst.msk [vmem:[#allocation17 + $0x20] sm:$0xff] %vm359_vm1, %v586_v28  ;;  %v1867_v28 = vor.u32 %v2118_v21, %v1866_v62  ;;  %v1930_v62 = vld [vmem:[#allocation11 + $0x1b0] sm:$0xf]  ;;  %v1764_v21 = vld [vmem:[#allocation11 + $0x68] sm:$0xf0] }
0x121e   :  { %1270 = vmatpush.bf16.msrb.mxu2 %v1867_v28  ;;  %v1812_v28 = vld [vmem:[#allocation11 + $0xc8] sm:$0xf0] }
0x121f   :  { %v1815_v29 = vor.u32 %v2103_v27, %v1812_v28  ;;  %v2137_v27 = vld [vmem:[#allocation11 + $0x1d4] sm:$0xf]  ;;  %v1948_v28 = vld [vmem:[#allocation11 + $0x1d8] sm:$0xf0] }
0x1220   :  { %632 = vrot.lane.b32.xlu1 %v2768_v26, %s2500_s26  ;;  %v1827_v26 = vor.u32 %v2108_v42, %v1826_v22  ;;  %v1859_v22 = vor.u32 %v2116_v36, %v1858_v31  ;;  %v1722_v42 = vld [vmem:[#allocation11 + $0x10] sm:$0xf]  ;;  %v2132_v31 = vld [vmem:[#allocation11 + $0x1a4] sm:$0xf0]  ;;  %v1756_v36 = vld [vmem:[#allocation11 + $0x58] sm:$0xf0] }
0x1221   :  { %v1723_v55 = vor.u32 %v2082_v43, %v1722_v42  ;;  %v1914_v43 = vld [vmem:[#allocation11 + $0x190] sm:$0xf] }
0x1222   :  { %1254 = vmatpush.bf16.msrb.mxu1 %v1827_v26  ;;  %1271 = vmatpush.bf16.msrb.mxu2 %v1859_v22  ;;  %v1804_v22 = vld [vmem:[#allocation11 + $0xb8] sm:$0xf0] }
0x1223   :  { %1246 = vmatpush.bf16.msrb.mxu0 %v1723_v55  ;;  %v1807_v42 = vor.u32 %v2101_v41, %v1804_v22  ;;  %v1906_v55 = vld [vmem:[#allocation11 + $0x180] sm:$0xf] }
0x1226   :  { %1255 = vmatpush.bf16.msrb.mxu1 %v1819_v14  ;;  %v1779_v14 = vor.u32 %v2096_v52, %v1778_v51  ;;  %1272 = vmatpush.bf16.msrb.mxu2 %v1851_v56  ;;  %v1879_v51 = vor.u32 %v2119_v48, %v1876_v50  ;;  %v2099_v52 = vld [vmem:[#allocation11 + $0xa4] sm:$0xf]  ;;  %v2128_v56 = vld [vmem:[#allocation11 + $0x184] sm:$0xf0]  ;;  %v1924_v48 = vld [vmem:[#allocation11 + $0x1a8] sm:$0xf0] }
0x1227   :  { %1247 = vmatpush.bf16.msrb.mxu0 %v1715_v33  ;;  %v1799_v54 = vor.u32 %v2099_v52, %v1796_v53  ;;  %v1907_v57 = vor.u32 %v2128_v56, %v1906_v55  ;;  %v1916_v55 = vld [vmem:[#allocation11 + $0x198] sm:$0xf0] }
0x122a   :  { %1256 = vmatpush.bf16.msrb.mxu1 %v1811_v4  ;;  %1273 = vmatpush.bf16.msrb.mxu2 %v1843_v45  ;;  %v2097_v45 = vld [vmem:[#allocation11 + $0x94] sm:$0xf] }
0x122b   :  { %1292 = vmatpush.bf16.msra.mxu0 %v1775_v10  ;;  %v1860_v10 = vld [vmem:[#allocation11 + $0x128] sm:$0xf0] }
0x122e   :  { %1257 = vmatpush.bf16.msrb.mxu1 %v1803_v20 }
0x1232   :  { %1258 = vmatpush.bf16.msrb.mxu1 %v1795_v34  ;;  %v2089_v34 = vld [vmem:[#allocation11 + $0x54] sm:$0xf] }
0x1233   :  { %v1759_v38 = vor.u32 %v2089_v34, %v1756_v36  ;;  %v1716_v34 = vld [vmem:[#allocation11 + $0x8] sm:$0xf0]  ;;  %v2111_v36 = vld [vmem:[#allocation11 + $0x104] sm:$0xf] }
0x1236   :  { %1259 = vmatpush.bf16.msrb.mxu1 %v1787_v47  ;;  %v1748_v47 = vld [vmem:[#allocation11 + $0x48] sm:$0xf0] }
0x123a   :  { %1260 = vmatpush.bf16.msrb.mxu1 %v1779_v14  ;;  %v2117_v14 = vld [vmem:[#allocation11 + $0x134] sm:$0xf] }
0x123b   :  { %v1871_v5 = vor.u32 %v2117_v14, %v1868_v61 }
0x1280   :  { %v727_v11 = vpop.permute.xlu0 %726 }
0x1281   :  { %730 = vst.msk [vmem:[#allocation17 + $0x38] sm:$0xff] %vm359_vm1, %v727_v11  ;;  %v1900_v11 = vld [vmem:[#allocation11 + $0x178] sm:$0xf0] }
0x1282   :  { %v2805_v19 = vpop.permute.xlu1 %741  ;;  %v1903_v13 = vor.u32 %v2125_v9, %v1900_v11  ;;  %v2115_v9 = vld [vmem:[#allocation11 + $0x124] sm:$0xf] }
0x1283   :  { %1708 = vmatmul.msk.bf16.vlgmr.msra.gmra.mxu3 %vm359_vm1, %v2805_v19  ;;  %1709 = vmatmul.msk.bf16.vlgmr.msra.gmra.mxu1 %vm359_vm1, %v2805_v19 }
0x1284   :  { %1710 = vmatmul.msk.bf16.vlgmr.msra.gmra.mxu2 %vm359_vm1, %v2805_v19  ;;  %1279 = vmatpush.bf16.msra.mxu3 %v1963_v18  ;;  %v2134_v18 = vld [vmem:[#allocation11 + $0x1b4] sm:$0xf0] }
0x1285   :  { %1305 = vmatpush.bf16.msra.mxu1 %v1839_v63  ;;  %1318 = vmatpush.bf16.msra.mxu2 %v1903_v13  ;;  %v1931_v20 = vor.u32 %v2134_v18, %v1930_v62  ;;  %v2141_v63 = vld [vmem:[#allocation11 + $0x1f4] sm:$0xf]  ;;  %v1863_v13 = vor.u32 %v2115_v9, %v1860_v10  ;;  %v2095_v62 = vld [vmem:[#allocation11 + $0x84] sm:$0xf]  ;;  %v1780_v18 = vld [vmem:[#allocation11 + $0x88] sm:$0xf0] }
0x1286   :  { %v1967_v33 = vor.u32 %v2141_v63, %v1964_v2  ;;  %v2127_v63 = vld [vmem:[#allocation11 + $0x184] sm:$0xf]  ;;  %v1908_v2 = vld [vmem:[#allocation11 + $0x188] sm:$0xf0] }
0x1288   :  { %1280 = vmatpush.bf16.msra.mxu3 %v1955_v32  ;;  %v1923_v32 = vor.u32 %v2132_v31, %v1922_v30  ;;  %v1951_v30 = vor.u32 %v2137_v27, %v1948_v28  ;;  %v2157_v27 = vld [vmem:[#allocation14 + $0x70] sm:$0xff]  ;;  %v2144_v28 = vld [vmem:[#allocation14 + $0x8] sm:$0xff] }
0x1289   :  { %1306 = vmatpush.bf16.msra.mxu1 %v1831_v6  ;;  %1319 = vmatpush.bf16.msra.mxu2 %v1895_v25  ;;  %v2083_v6 = vld [vmem:[#allocation11 + $0x24] sm:$0xf]  ;;  %v1852_v25 = vld [vmem:[#allocation11 + $0x118] sm:$0xf0] }
0x128a   :  { %v492_v26 = vpop.permute.xlu1 %491  ;;  %v1735_v11 = vor.u32 %v2083_v6, %v1732_v8  ;;  %v1911_v6 = vor.u32 %v2127_v63, %v1908_v2 }
0x128b   :  { %495 = vst.msk [vmem:[#allocation17 + $0x10] sm:$0xff] %vm359_vm1, %v492_v26  ;;  %v2087_v26 = vld [vmem:[#allocation11 + $0x44] sm:$0xf] }
0x128c   :  { %1281 = vmatpush.bf16.msra.mxu3 %v1947_v46  ;;  %v1915_v46 = vor.u32 %v2130_v44, %v1914_v43  ;;  %v1751_v49 = vor.u32 %v2087_v26, %v1748_v47  ;;  %v1932_v43 = vld [vmem:[#allocation11 + $0x1b8] sm:$0xf0]  ;;  %v2131_v47 = vld [vmem:[#allocation11 + $0x1a4] sm:$0xf] }
0x128d   :  { %1307 = vmatpush.bf16.msra.mxu1 %v1823_v17  ;;  %1320 = vmatpush.bf16.msra.mxu2 %v1887_v40  ;;  %v1959_v17 = vor.u32 %v2139_v15, %v1956_v16  ;;  %v1940_v40 = vld [vmem:[#allocation11 + $0x1c8] sm:$0xf0]  ;;  %v1927_v52 = vor.u32 %v2131_v47, %v1924_v48  ;;  %v2166_v47 = vld [vmem:[%s2878_s12 + $0x38] sm:$0xff] }
0x128e   :  { %v1943_v22 = vor.u32 %v2135_v39, %v1940_v40  ;;  %v2152_v40 = vld [vmem:[#allocation14 + $0x48] sm:$0xff] }
0x1290   :  { %1282 = vmatpush.bf16.msra.mxu3 %v1939_v59  ;;  %v1740_v59 = vld [vmem:[#allocation11 + $0x38] sm:$0xf0] }
0x1291   :  { %1308 = vmatpush.bf16.msra.mxu1 %v1815_v29  ;;  %1321 = vmatpush.bf16.msra.mxu2 %v1879_v51  ;;  %v1743_v60 = vor.u32 %v2085_v58, %v1740_v59 }
0x1292   :  { %v633_v4 = vpop.permute.xlu1 %632 }
0x1293   :  { %636 = vst.msk [vmem:[#allocation17 + $0x28] sm:$0xff] %vm359_vm1, %v633_v4  ;;  %1711 = vmatmul.msk.bf16.vlgmr.msrb.gmra.mxu3 %vm359_vm1, %v2805_v19  ;;  %v2091_v19 = vld [vmem:[#allocation11 + $0x64] sm:$0xf]  ;;  %v1788_v4 = vld [vmem:[#allocation11 + $0x98] sm:$0xf0] }
0x1294   :  { %v1767_v23 = vor.u32 %v2091_v19, %v1764_v21  ;;  %1283 = vmatpush.bf16.msra.mxu3 %v1931_v20  ;;  %v1791_v7 = vor.u32 %v2097_v45, %v1788_v4  ;;  %v2820_v20 = vld [vmem:[%s2873_s7] sm:$0xf]  ;;  %v1783_v19 = vor.u32 %v2095_v62, %v1780_v18  ;;  %v2081_v21 = vld [vmem:[#allocation11 + $0x14] sm:$0xf] }
0x1295   :  { %1309 = vmatpush.bf16.msra.mxu1 %v1807_v42  ;;  %1322 = vmatpush.bf16.msra.mxu2 %v1871_v5  ;;  %v1727_v24 = vor.u32 %v2081_v21, %v1724_v1  ;;  %v261_v31 = vperm.slane %v2820_v20, 1  ;;  %v2133_v42 = vld [vmem:[#allocation11 + $0x1b4] sm:$0xf]  ;;  %v262_v51 = vperm.slane %v2820_v20, 2  ;;  %v2150_v21 = vld [vmem:[#allocation14 + $0x38] sm:$0xff] }
0x1296   :  { %1293 = vmatpush.bf16.msra.mxu0 %v1767_v23  ;;  %v2113_v23 = vld [vmem:[#allocation11 + $0x114] sm:$0xf]  ;;  %1606 = dma.vmem_to_hbm [thread:$0]  %s1599_s16, 1024, %s1601_s8, [#allocation4], %s2506_s23, %s2506_s23, %s2507_s24  }
0x1297   :  { %v1855_v29 = vor.u32 %v2113_v23, %v1852_v25  ;;  %v314_v44 = vadd.f32 %v2667_v12, %v261_v31  ;;  %v327_v58 = vadd.f32 %v2686_v35, %v262_v51  ;;  %v2149_v1 = vld [vmem:[#allocation14 + $0x30] sm:$0xff]  ;;  %v2148_v23 = vld [vmem:[#allocation14 + $0x28] sm:$0xff]  ;;  %v2143_v31 = vld [vmem:[#allocation14] sm:$0xff] }
0x1298   :  { %1284 = vmatpush.bf16.msra.mxu3 %v1923_v32  ;;  %v2079_v32 = vld [vmem:[#allocation11 + $0x4] sm:$0xf]  ;;  %v2145_v25 = vld [vmem:[#allocation14 + $0x10] sm:$0xff] }
0x1299   :  { %1310 = vmatpush.bf16.msra.mxu1 %v1799_v54  ;;  %1323 = vmatpush.bf16.msra.mxu2 %v1863_v13  ;;  %v1719_v37 = vor.u32 %v2079_v32, %v1716_v34  ;;  %v2129_v54 = vld [vmem:[#allocation11 + $0x194] sm:$0xf]  ;;  %v2155_v32 = vld [vmem:[#allocation14 + $0x60] sm:$0xff]  ;;  %v2154_v34 = vld [vmem:[#allocation14 + $0x58] sm:$0xff] }
0x129a   :  { %1294 = vmatpush.bf16.msra.mxu0 %v1759_v38  ;;  %v1844_v38 = vld [vmem:[#allocation11 + $0x108] sm:$0xf0]  ;;  %v1919_v59 = vor.u32 %v2129_v54, %v1916_v55 }
0x129b   :  { %v1847_v41 = vor.u32 %v2111_v36, %v1844_v38 }
0x129c   :  { %1285 = vmatpush.bf16.msra.mxu3 %v1915_v46  ;;  %v1935_v46 = vor.u32 %v2133_v42, %v1932_v43 }
0x129d   :  { %1311 = vmatpush.bf16.msra.mxu1 %v1791_v7  ;;  %1324 = vmatpush.bf16.msra.mxu2 %v1855_v29  ;;  %v2156_v29 = vld [vmem:[#allocation14 + $0x68] sm:$0xff] }
0x129e   :  { %1295 = vmatpush.bf16.msra.mxu0 %v1751_v49  ;;  %v260_v49 = vperm.slane %v2820_v20, 0 }
0x12a0   :  { %1286 = vmatpush.bf16.msra.mxu3 %v1907_v57  ;;  %v301_v56 = vadd.f32 %v2715_v0, %v260_v49  ;;  %v2165_v49 = vld [vmem:[%s2878_s12 + $0x30] sm:$0xff] }
0x12a1   :  { %1312 = vmatpush.bf16.msra.mxu1 %v1783_v19  ;;  %1325 = vmatpush.bf16.msra.mxu2 %v1847_v41  ;;  %v914_v41 = vld [vmem:[#allocation13] sm:$0x3] }
0x12a2   :  { %1296 = vmatpush.bf16.msra.mxu0 %v1743_v60  ;;  %v916_v43 = vperm.slane %v914_v41, 0 }
0x12a4   :  { %1331 = vmatpush.bf16.msrb.mxu3 %v1967_v33 }
0x12a6   :  { %1297 = vmatpush.bf16.msra.mxu0 %v1735_v11  ;;  %v263_v11 = vperm.slane %v2820_v20, 3  ;;  %v2147_v20 = vld [vmem:[#allocation14 + $0x20] sm:$0xff] }
0x12a8   :  { %1332 = vmatpush.bf16.msrb.mxu3 %v1959_v17  ;;  %v340_v13 = vadd.f32 %v2718_v3, %v263_v11  ;;  %v2146_v3 = vld [vmem:[#allocation14 + $0x18] sm:$0xff]  ;;  %v2159_v11 = vld [vmem:[%s2878_s12] sm:$0xff] }
0x12aa   :  { %1298 = vmatpush.bf16.msra.mxu0 %v1727_v24  ;;  %v2158_v24 = vld [vmem:[#allocation14 + $0x78] sm:$0xff] }
0x12ac   :  { %1333 = vmatpush.bf16.msrb.mxu3 %v1951_v30 }
0x12ae   :  { %1299 = vmatpush.bf16.msra.mxu0 %v1719_v37  ;;  %v2153_v37 = vld [vmem:[#allocation14 + $0x50] sm:$0xff] }
0x12b0   :  { %1334 = vmatpush.bf16.msrb.mxu3 %v1943_v22 }
0x12b4   :  { %1335 = vmatpush.bf16.msrb.mxu3 %v1935_v46 }
0x12b8   :  { %1336 = vmatpush.bf16.msrb.mxu3 %v1927_v52 }
0x12bc   :  { %1337 = vmatpush.bf16.msrb.mxu3 %v1919_v59 }
0x12c0   :  { %1338 = vmatpush.bf16.msrb.mxu3 %v1911_v6 }
0x1300   :  { %v808_v26 = vpop.f32.mrf.mxu1 }
0x1301   :  { %v809_v50 = vadd.f32 %v808_v26, %v314_v44  ;;  %v2151_v44 = vld [vmem:[#allocation14 + $0x40] sm:$0xff] }
0x1303   :  { %v839_v53 = vmul.f32 0.2, %v809_v50 }
0x1305   :  { %v843_v57 = vmax.f32 %v809_v50, %v839_v53 }
0x1306   :  { %v795_v12 = vpop.f32.mrf.mxu3 }
0x1307   :  { %v847_v14 = vpack.c.bf16 %v843_v57, %v843_v57  ;;  %v796_v60 = vadd.f32 %v795_v12, %v301_v56  ;;  %v821_v61 = vpop.f32.mrf.mxu2 }
0x1308   :  { %v822_v5 = vadd.f32 %v821_v61, %v327_v58  ;;  %v810_v33 = vpop.f32.mrf.mxu1  ;;  %v917_v58 = vperm.slane %v914_v41, 1 }
0x1309   :  { %v838_v45 = vmul.f32 0.2, %v796_v60  ;;  %1261 = vmatmul.bf16.vlgmr.msrb.gmra.mxu1 %v847_v14 }
0x130a   :  { %v840_v4 = vmul.f32 0.2, %v822_v5  ;;  %1495 = vmatpush.bf16.msrb.mxu1 %v2158_v24 }
0x130b   :  { %v842_v7 = vmax.f32 %v796_v60, %v838_v45 }
0x130c   :  { %v844_v0 = vmax.f32 %v822_v5, %v840_v4 }
0x130d   :  { %v846_v8 = vpack.c.bf16 %v842_v7, %v842_v7 }
0x130e   :  { %v848_v9 = vpack.c.bf16 %v844_v0, %v844_v0  ;;  %v797_v35 = vpop.f32.mrf.mxu3  ;;  %1496 = vmatpush.bf16.msrb.mxu1 %v2157_v27  ;;  %v2164_v0 = vld [vmem:[%s2878_s12 + $0x28] sm:$0xff] }
0x130f   :  { %v823_v10 = vpop.f32.mrf.mxu2  ;;  %1248 = vmatmul.bf16.vlgmr.msrb.gmra.mxu0 %v846_v8  ;;  %v2161_v35 = vld [vmem:[%s2878_s12 + $0x10] sm:$0xff] }
0x1310   :  { %1274 = vmatmul.bf16.vlgmr.msrb.gmra.mxu2 %v848_v9  ;;  %1482 = vmatpush.bf16.msrb.mxu0 %v2150_v21  ;;  %v2160_v10 = vld [vmem:[%s2878_s12 + $0x8] sm:$0xff] }
0x1311   :  { %1579 = vmatpush.bf16.msrb.mxu2 %v2166_v47 }
0x1312   :  { %1497 = vmatpush.bf16.msrb.mxu1 %v2156_v29 }
0x1314   :  { %1483 = vmatpush.bf16.msrb.mxu0 %v2149_v1 }
0x1315   :  { %1580 = vmatpush.bf16.msrb.mxu2 %v2165_v49 }
0x1316   :  { %v834_v15 = vpop.f32.mrf.mxu3  ;;  %1498 = vmatpush.bf16.msrb.mxu1 %v2155_v32 }
0x1317   :  { %v835_v16 = vadd.f32 %v834_v15, %v340_v13 }
0x1318   :  { %1484 = vmatpush.bf16.msrb.mxu0 %v2148_v23 }
0x1319   :  { %v841_v17 = vmul.f32 0.2, %v835_v16  ;;  %1313 = vmatmul.bf16.vlgmr.msra.gmra.mxu1 %v847_v14  ;;  %1581 = vmatpush.bf16.msrb.mxu2 %v2164_v0 }
0x131a   :  { %1499 = vmatpush.bf16.msrb.mxu1 %v2154_v34 }
0x131b   :  { %v845_v62 = vmax.f32 %v835_v16, %v841_v17  ;;  %v2187_v16 = vld [vmem:[#allocation16] ss:$0 sm:$0xff] }
0x131c   :  { %1485 = vmatpush.bf16.msrb.mxu0 %v2147_v20  ;;  %v2188_v20 = vld [vmem:[%s2879_s13] ss:$0 sm:$0xff] }
0x131d   :  { %v849_v18 = vpack.c.bf16 %v845_v62, %v845_v62 }
0x131e   :  { %v836_v19 = vpop.f32.mrf.mxu3  ;;  %1500 = vmatpush.bf16.msrb.mxu1 %v2153_v37 }
0x131f   :  { %1287 = vmatmul.bf16.vlgmr.msra.gmra.mxu3 %v849_v18  ;;  %1300 = vmatmul.bf16.vlgmr.msra.gmra.mxu0 %v846_v8  ;;  %v2163_v8 = vld [vmem:[%s2878_s12 + $0x20] sm:$0xff] }
0x1320   :  { %1326 = vmatmul.bf16.vlgmr.msra.gmra.mxu2 %v848_v9  ;;  %1486 = vmatpush.bf16.msrb.mxu0 %v2146_v3  ;;  %v2162_v9 = vld [vmem:[%s2878_s12 + $0x18] sm:$0xff] }
0x1321   :  { %1582 = vmatpush.bf16.msrb.mxu2 %v2163_v8 }
0x1322   :  { %1501 = vmatpush.bf16.msrb.mxu1 %v2152_v40 }
0x1324   :  { %1487 = vmatpush.bf16.msrb.mxu0 %v2145_v25 }
0x1325   :  { %1583 = vmatpush.bf16.msrb.mxu2 %v2162_v9 }
0x1326   :  { %1502 = vmatpush.bf16.msrb.mxu1 %v2151_v44 }
0x1328   :  { %1488 = vmatpush.bf16.msrb.mxu0 %v2144_v28 }
0x1329   :  { %1584 = vmatpush.bf16.msrb.mxu2 %v2161_v35 }
0x132c   :  { %1489 = vmatpush.bf16.msrb.mxu0 %v2143_v31 }
0x132d   :  { %1585 = vmatpush.bf16.msrb.mxu2 %v2160_v10 }
0x132f   :  { %1339 = vmatmul.bf16.vlgmr.msrb.gmra.mxu3 %v849_v18 }
0x1331   :  { %1586 = vmatpush.bf16.msrb.mxu2 %v2159_v11 }
0x1386   :  { %v1262_v30 = vpop.f32.mrf.mxu1 }
0x138c   :  { %v1249_v36 = vpop.f32.mrf.mxu0 }
0x138d   :  { %v1250_v46 = vadd.f32 %v1249_v36, %v916_v43 }
0x138e   :  { %v1264_v38 = vpop.f32.mrf.mxu1 }
0x138f   :  { %v1263_v51 = vadd.f32 %v1262_v30, %v1250_v46 }
0x1393   :  { %v1275_v39 = vpop.f32.mrf.mxu2 }
0x1394   :  { %v1251_v22 = vpop.f32.mrf.mxu0  ;;  %v1276_v52 = vadd.f32 %v1275_v39, %v1263_v51 }
0x1396   :  { %v1314_v42 = vpop.f32.mrf.mxu1 }
0x139b   :  { %v1277_v26 = vpop.f32.mrf.mxu2 }
0x139c   :  { %v1301_v48 = vpop.f32.mrf.mxu0 }
0x139d   :  { %v1302_v60 = vadd.f32 %v1301_v48, %v917_v58 }
0x139e   :  { %v1316_v50 = vpop.f32.mrf.mxu1 }
0x139f   :  { %v1315_v63 = vadd.f32 %v1314_v42, %v1302_v60 }
0x13a2   :  { %v1288_v53 = vpop.f32.mrf.mxu3 }
0x13a3   :  { %v1289_v54 = vadd.f32 %v1288_v53, %v1276_v52  ;;  %v1327_v55 = vpop.f32.mrf.mxu2 }
0x13a4   :  { %v1303_v56 = vpop.f32.mrf.mxu0  ;;  %v1328_v2 = vadd.f32 %v1327_v55, %v1315_v63 }
0x13a5   :  { %v1344_v57 = vmul.f32 0.2, %v1289_v54 }
0x13a7   :  { %v1346_v12 = vmax.f32 %v1289_v54, %v1344_v57 }
0x13a9   :  { %v1348_v59 = vpack.c.bf16 %v1346_v12, %v1346_v12 }
0x13aa   :  { %v1290_v14 = vpop.f32.mrf.mxu3 }
0x13ab   :  { %v1329_v61 = vpop.f32.mrf.mxu2  ;;  %1490 = vmatmul.bf16.vlgmr.msrb.gmra.mxu0 %v1348_v59 }
0x13b2   :  { %v1340_v5 = vpop.f32.mrf.mxu3 }
0x13b3   :  { %v1341_v33 = vadd.f32 %v1340_v5, %v1328_v2 }
0x13b5   :  { %v1345_v45 = vmul.f32 0.2, %v1341_v33 }
0x13b7   :  { %v1347_v4 = vmax.f32 %v1341_v33, %v1345_v45 }
0x13b9   :  { %v1349_v6 = vpack.c.bf16 %v1347_v4, %v1347_v4 }
0x13ba   :  { %v1342_v7 = vpop.f32.mrf.mxu3 }
0x13bb   :  { %1503 = vmatmul.bf16.vlgmr.msrb.gmra.mxu1 %v1349_v6 }
0x1428   :  { %v1491_v13 = vpop.f32.mrf.mxu0 }
0x1429   :  { %v1492_v17 = vadd.f32 %v2187_v16, %v1491_v13 }
0x1430   :  { %v1493_v15 = vpop.f32.mrf.mxu0 }
0x1438   :  { %v1504_v62 = vpop.f32.mrf.mxu1 }
0x1439   :  { %v1505_v18 = vadd.f32 %v1504_v62, %v1492_v17 }
0x143b   :  { %v1508_v19 = vmul.f32 0.2, %v1505_v18 }
0x143d   :  { %v1509_v21 = vmax.f32 %v1505_v18, %v1508_v19 }
0x143f   :  { %v1510_v1 = vpack.c.bf16 %v1509_v21, %v1509_v21 }
0x1440   :  { %v1506_v23 = vpop.f32.mrf.mxu1 }
0x1441   :  { %1587 = vmatmul.bf16.vlgmr.msrb.gmra.mxu2 %v1510_v1 }
0x14c4   :  { %v1588_v3 = vpop.f32.mrf.mxu2 }
0x14c5   :  { %v1589_v24 = vadd.f32 %v2188_v20, %v1588_v3 }
0x14c7   :  { %1593 = vst.msk [vmem:[#allocation18] sm:$0xff] %vm1592_vm2, %v1589_v24 }
0x14c8   :  { %1617 = dma.vmem_to_hbm [thread:$0]  %s1613_s0, 128, %s1615_s6, [#allocation19]  }
0x14cc   :  { %v1590_v25 = vpop.f32.mrf.mxu2 }
0x14cd   :  { %2495 = dma.done.wait [#allocation4], 1024  }
0x14ce   :  { %2496 = vsyncadd [#allocation4], 4294966272 }
0x14cf   :  { %2497 = dma.done.wait [#allocation19], 128  }
0x14d0   :  { %2498 = vsyncadd [#allocation19], 4294967168 }
0x14d1   :  { %1626 = vsyncpa [#allocation3], 1 }
0x14d2   :  { %1627 = vsyncpa [#allocation6], 1 }
0x14d3   :  { %1628 = vsyncpa [#allocation9], 1 }
0x14d4   :  { %1629 = vsyncpa [#allocation12], 1 }
0x14d5   :  { %1630 = vsyncpa [#allocation15], 1 }
0x14d6   :  { %1631 = vsyncpa [#allocation4], 1 }
0x14d7   :  { %1632 = vsyncpa [#allocation19], 1 }

</bundles_post_ra>
